<compile_context>
chip_gen: v6e
topology: v6e:2x2x1
jax: 0.10.0
libtpu: 0.0.40
codegen_flags: <defaults>
</compile_context>

<pallas_src>
import functools

import jax
import jax.numpy as jnp
import numpy as np
from jax.experimental import pallas as pl
from jax.experimental.pallas import tpu as pltpu

NUM_GROUPS = 32
EPS = 1e-6


# --------------------------------------------------------------------------
# Kernel 1: GroupNorm-apply + q/k/v 1x1-conv projections.
#   grid = (B, N // tn), channel-major (C, tn) tiles (NCHW consumed in place).
#   a_ref / s_ref hold the pre-folded per-(b, c) scale and shift.
# --------------------------------------------------------------------------
def _gn_qkv_kernel(x_ref, a_ref, s_ref,
                   wq_ref, bq_ref, wk_ref, bk_ref, wv_ref, bv_ref,
                   q_ref, k_ref, v_ref):
    x = x_ref[0]                                   # (C, tn) fp32
    h = x * a_ref[0] + s_ref[0]                    # GroupNorm (scale/shift folded)
    h_b = h.astype(jnp.bfloat16)

    def proj(w_ref, b_ref):                        # (C_out, tn) fp32, MXU-native
        return jnp.dot(w_ref[...], h_b, preferred_element_type=jnp.float32) + b_ref[...]

    q_ref[0] = proj(wq_ref, bq_ref).astype(jnp.bfloat16)      # (C, tn), 1/sqrt(C) folded
    v_ref[0] = proj(wv_ref, bv_ref).astype(jnp.bfloat16)      # (C, tn)
    # K is consumed row-major in kernel 2 (scores LHS): one fp32 XLU transpose/tile.
    k_ref[0] = proj(wk_ref, bk_ref).T.astype(jnp.bfloat16)    # (tn, C)


# --------------------------------------------------------------------------
# Kernel 2: flash attention (online softmax) + proj_out + residual.
#   grid = (B, kv_tiles); K/V are read from HBM exactly once per batch.
#   Everything stays channel-major -> zero in-kernel transposes, output is NCHW.
# --------------------------------------------------------------------------
def _make_flash_kernel(nq, tq):
    def kernel(x_ref, q_ref, k_ref, v_ref, wp_ref, bp_ref, o_ref,
               m_sc, l_sc, acc_sc):
        kv = pl.program_id(1)

        @pl.when(kv == 0)
        def _init():
            m_sc[...] = jnp.full_like(m_sc, -jnp.inf)
            l_sc[...] = jnp.zeros_like(l_sc)
            acc_sc[...] = jnp.zeros_like(acc_sc)

        k_t = k_ref[0]                             # (tk, C) bf16  (row-major)
        v_t = v_ref[0]                             # (C, tk) bf16  (channel-major)

        # Static unroll over resident q tiles; all slices are static -> clean lowering.
        for i in range(nq):
            sl = slice(i * tq, (i + 1) * tq)
            qt = q_ref[0, :, sl]                   # (C, tq) bf16, softmax scale folded
            s = jnp.dot(k_t, qt, preferred_element_type=jnp.float32)   # (tk, tq) = S^T
            m_prev = m_sc[:, sl]                   # (1, tq)
            m_new = jnp.maximum(m_prev, jnp.max(s, axis=0, keepdims=True))
            alpha = jnp.exp(m_prev - m_new)        # rescale previous partials
            p = jnp.exp(s - m_new)                 # unnormalized probs (tk, tq)
            l_sc[:, sl] = alpha * l_sc[:, sl] + jnp.sum(p, axis=0, keepdims=True)
            acc_sc[:, sl] = alpha * acc_sc[:, sl] + jnp.dot(
                v_t, p.astype(jnp.bfloat16), preferred_element_type=jnp.float32)
            m_sc[:, sl] = m_new

        @pl.when(kv == pl.num_programs(1) - 1)
        def _finalize():
            for i in range(nq):
                sl = slice(i * tq, (i + 1) * tq)
                inv_l = pl.reciprocal(l_sc[:, sl], approx=False)       # exact 1/l
                o = (acc_sc[:, sl] * inv_l).astype(jnp.bfloat16)        # (C, tq)
                y = jnp.dot(wp_ref[...], o,
                            preferred_element_type=jnp.float32) + bp_ref[...]
                o_ref[0, :, sl] = x_ref[0, :, sl] + y                   # proj_out + residual

    return kernel


# --------------------------------------------------------------------------
# Wrapper
# --------------------------------------------------------------------------
def _pick_tile(n, target, multiple=128):
    """Largest multiple of `multiple` dividing n and <= target; fall back to
    multiples of 8; last resort (tiny/odd n) the full axis."""
    for m in (multiple, 8):
        best, t = 0, m
        while t <= min(n, target):
            if n % t == 0:
                best = t
            t += m
        if best:
            return best
    return n


@functools.partial(jax.jit, static_argnames=("q_tile", "kv_tile", "n_tile"))
def memory_efficient_attn_block(x_nchw, params, q_tile=512, kv_tile=512, n_tile=512):
    """x_nchw: (B, C, H, W) float32. params: dict of weights. Returns NCHW fp32."""
    gamma, beta = params["gamma"], params["beta"]
    wq, bq, wk, bk = params["wq"], params["bq"], params["wk"], params["bk"]
    wv, bv, wp, bp = params["wv"], params["bv"], params["wp"], params["bp"]

    B, C, H, W = x_nchw.shape
    N = H * W
    assert C % NUM_GROUPS == 0, "GroupNorm(32) requires channels divisible by 32"

    # NCHW -> (B, C, N): a pure reshape, no transpose / extra HBM pass.
    x = x_nchw.reshape(B, C, N).astype(jnp.float32)

    # -- GroupNorm statistics in plain XLA (two-pass fp32: no E[x^2]-E[x]^2
    #    cancellation), folded with gamma/beta into per-(b, c) scale + shift. -----
    g = C // NUM_GROUPS
    xg = x.reshape(B, NUM_GROUPS, g * N)
    mean = jnp.mean(xg, axis=-1)                                   # (B, 32)
    var = jnp.mean(jnp.square(xg - mean[..., None]), axis=-1)      # (B, 32)
    rstd = jax.lax.rsqrt(var + EPS)
    mean_c = jnp.repeat(mean, g, axis=1)                           # (B, C)
    rstd_c = jnp.repeat(rstd, g, axis=1)
    a = (rstd_c * gamma[None, :]).reshape(B, C, 1)
    shift = (beta[None, :] - mean_c * rstd_c * gamma[None, :]).reshape(B, C, 1)

    scale = 1.0 / float(C) ** 0.5                  # fold softmax scale into q proj
    col = lambda v: v.reshape(C, 1).astype(jnp.float32)
    wb = lambda w: w.astype(jnp.bfloat16)

    # ---- kernel 1: GroupNorm apply + q/k/v projections, tiled over (B, N//tn) ----
    tn = _pick_tile(N, n_tile)
    cn_spec = lambda: pl.BlockSpec((1, C, tn), lambda b, i: (b, 0, i))
    nc_spec = lambda: pl.BlockSpec((1, tn, C), lambda b, i: (b, i, 0))
    w_spec = lambda: pl.BlockSpec((C, C), lambda b, i: (0, 0))
    b_spec = lambda: pl.BlockSpec((C, 1), lambda b, i: (0, 0))
    ab_spec = lambda: pl.BlockSpec((1, C, 1), lambda b, i: (b, 0, 0))

    q, k, v = pl.pallas_call(
        _gn_qkv_kernel,
        out_shape=(jax.ShapeDtypeStruct((B, C, N), jnp.bfloat16),   # q, channel-major
                   jax.ShapeDtypeStruct((B, N, C), jnp.bfloat16),   # k, row-major
                   jax.ShapeDtypeStruct((B, C, N), jnp.bfloat16)),  # v, channel-major
        grid_spec=pltpu.PrefetchScalarGridSpec(
            num_scalar_prefetch=0,
            grid=(B, N // tn),
            in_specs=[cn_spec(), ab_spec(), ab_spec(),
                      w_spec(), b_spec(),
                      w_spec(), b_spec(),
                      w_spec(), b_spec()],
            out_specs=[cn_spec(), nc_spec(), cn_spec()],
        ),
        compiler_params=pltpu.CompilerParams(
            dimension_semantics=("parallel", "parallel")),
    )(x, a, shift,
      wb(wq * scale), col(bq * scale), wb(wk), col(bk), wb(wv), col(bv))

    # ---- kernel 2: flash attention + proj_out + residual, K/V streamed once ------
    tq = _pick_tile(N, q_tile)
    tk = _pick_tile(N, kv_tile)
    nq, nk = N // tq, N // tk

    vmem_est = (2 * (4 + 2 + 4) * C * N            # x(f32) + q(bf16) + out(f32), 2-buffered
                + 2 * 2 * (2 * tk * C)             # k + v bf16 streams, 2-buffered
                + 4 * C * N + 2 * 4 * N            # acc + m + l scratch
                + 2 * C * C + 4 * C)               # wp + bp
    vmem_limit = int(min(max(32 * 1024 * 1024, 1.2 * vmem_est), 100 * 1024 * 1024))

    cost = pl.CostEstimate(
        flops=int(B * (4 * N * N * C + 2 * N * C * C)),
        transcendentals=int(B * N * (N + nk)),
        bytes_accessed=int(B * N * C * (4 + 4 + 2 + 2 + 2) + 2 * C * C),
    )

    out = pl.pallas_call(
        _make_flash_kernel(nq, tq),
        out_shape=jax.ShapeDtypeStruct((B, C, N), jnp.float32),
        grid_spec=pltpu.PrefetchScalarGridSpec(
            num_scalar_prefetch=0,
            grid=(B, nk),
            in_specs=[
                pl.BlockSpec((1, C, N), lambda b, j: (b, 0, 0)),    # x residual (resident)
                pl.BlockSpec((1, C, N), lambda b, j: (b, 0, 0)),    # q (resident, scaled)
                pl.BlockSpec((1, tk, C), lambda b, j: (b, j, 0)),   # k (streamed once)
                pl.BlockSpec((1, C, tk), lambda b, j: (b, 0, j)),   # v (streamed once)
                pl.BlockSpec((C, C), lambda b, j: (0, 0)),          # wp
                pl.BlockSpec((C, 1), lambda b, j: (0, 0)),          # bp
            ],
            out_specs=pl.BlockSpec((1, C, N), lambda b, j: (b, 0, 0)),
            scratch_shapes=[
                pltpu.VMEM((1, N), jnp.float32),    # running max
                pltpu.VMEM((1, N), jnp.float32),    # running sum
                pltpu.VMEM((C, N), jnp.float32),    # fp32 output accumulator
            ],
        ),
        cost_estimate=cost,
        compiler_params=pltpu.CompilerParams(
            dimension_semantics=("parallel", "arbitrary"),
            vmem_limit_bytes=vmem_limit),
    )(x, q, k, v, wb(wp), col(bp))

    # (B, C, N) is already NCHW modulo a free reshape.
    return out.reshape(B, C, H, W)


# --------------------------------------------------------------------------
# Pure-JAX fp32 reference mirroring the PyTorch module (NCHW)
# --------------------------------------------------------------------------
def _reference(x, params):
    gamma, beta = params["gamma"], params["beta"]
    wq, bq, wk, bk = params["wq"], params["bq"], params["wk"], params["bk"]
    wv, bv, wp, bp = params["wv"], params["bv"], params["wp"], params["bp"]
    B, C, H, W = x.shape
    g = C // NUM_GROUPS
    xr = x.reshape(B, NUM_GROUPS, g, H, W)
    mean = xr.mean(axis=(2, 3, 4), keepdims=True)
    var = xr.var(axis=(2, 3, 4), keepdims=True)
    hn = (xr - mean) / jnp.sqrt(var + EPS)
    hn = hn.reshape(B, C, H, W) * gamma[None, :, None, None] + beta[None, :, None, None]

    def conv1x1(t, w, b):
        return jnp.einsum('oi,bihw->bohw', w, t) + b[None, :, None, None]

    q = conv1x1(hn, wq, bq)
    k = conv1x1(hn, wk, bk)
    v = conv1x1(hn, wv, bv)
    qf = q.reshape(B, C, H * W).transpose(0, 2, 1)
    kf = k.reshape(B, C, H * W).transpose(0, 2, 1)
    vf = v.reshape(B, C, H * W).transpose(0, 2, 1)
    s = jnp.einsum('bnc,bmc->bnm', qf, kf) / jnp.sqrt(C).astype(jnp.float32)
    p = jax.nn.softmax(s, axis=-1)
    o = jnp.einsum('bnm,bmc->bnc', p, vf)
    o = o.transpose(0, 2, 1).reshape(B, C, H, W)
    return x + conv1x1(o, wp, bp)


def _init_params(key, C):
    ks = jax.random.split(key, 10)
    scale = 0.1
    return {
        "gamma": 1.0 + scale * jax.random.normal(ks[0], (C,), jnp.float32),
        "beta": scale * jax.random.normal(ks[1], (C,), jnp.float32),
        "wq": scale * jax.random.normal(ks[2], (C, C), jnp.float32),
        "bq": scale * jax.random.normal(ks[3], (C,), jnp.float32),
        "wk": scale * jax.random.normal(ks[4], (C, C), jnp.float32),
        "bk": scale * jax.random.normal(ks[5], (C,), jnp.float32),
        "wv": scale * jax.random.normal(ks[6], (C, C), jnp.float32),
        "bv": scale * jax.random.normal(ks[7], (C,), jnp.float32),
        "wp": scale * jax.random.normal(ks[8], (C, C), jnp.float32),
        "bp": scale * jax.random.normal(ks[9], (C,), jnp.float32),
    }


if __name__ == "__main__":
    # GroupNorm(32) needs C % 32 == 0 -> smallest sensible C is 32.
    # H=W=16 -> N=256; small tiles so the kv grid loop, the in-kernel q-tile loop
    # and the kernel-1 N-tiling all run with >1 step.
    B, C, H, W = 2, 32, 16, 16
    key = jax.random.PRNGKey(0)
    kx, kp = jax.random.split(key)
    x = jax.random.normal(kx, (B, C, H, W), jnp.float32)
    params = _init_params(kp, C)

    out = memory_efficient_attn_block(x, params, q_tile=128, kv_tile=128, n_tile=128)
    out = jax.block_until_ready(out)

    ref = jax.block_until_ready(_reference(x, params))
    # bf16 matmul operands (fp32 accumulate) -> relaxed tolerance vs fp32 reference.
    np.testing.assert_allclose(np.asarray(out), np.asarray(ref), rtol=2e-2, atol=2e-2)

    print("KERNEL_OK")
</pallas_src>

<mosaic_0001>
module attributes {stable_mosaic.version = 11 : i64} {
  func.func @_gn_qkv_kernel(%arg0: i32, %arg1: i32, %arg2: memref<1x32x128xf32, #tpu.memory_space<vmem>>, %arg3: memref<1x32x1xf32, #tpu.memory_space<vmem>>, %arg4: memref<1x32x1xf32, #tpu.memory_space<vmem>>, %arg5: memref<32x32xbf16, #tpu.memory_space<vmem>>, %arg6: memref<32x1xf32, #tpu.memory_space<vmem>>, %arg7: memref<32x32xbf16, #tpu.memory_space<vmem>>, %arg8: memref<32x1xf32, #tpu.memory_space<vmem>>, %arg9: memref<32x32xbf16, #tpu.memory_space<vmem>>, %arg10: memref<32x1xf32, #tpu.memory_space<vmem>>, %arg11: memref<1x32x128xbf16, #tpu.memory_space<vmem>>, %arg12: memref<1x128x32xbf16, #tpu.memory_space<vmem>>, %arg13: memref<1x32x128xbf16, #tpu.memory_space<vmem>>) attributes {dimension_semantics = [#tpu.dimension_semantics<parallel>, #tpu.dimension_semantics<parallel>], iteration_bounds = array<i64: 2, 2>, scalar_prefetch = 0 : i64, scratch_operands = 0 : i64, tpu.core_type = #tpu.core_type<tc>, window_params = [{transform_indices = @transform_0, window_bounds = array<i64: 1, 32, 128>}, {transform_indices = @transform_1, window_bounds = array<i64: 1, 32, 1>}, {transform_indices = @transform_2, window_bounds = array<i64: 1, 32, 1>}, {pipeline_mode = #tpu.pipeline_mode<synchronous>, transform_indices = @transform_3, window_bounds = array<i64: 32, 32>}, {pipeline_mode = #tpu.pipeline_mode<synchronous>, transform_indices = @transform_4, window_bounds = array<i64: 32, 1>}, {pipeline_mode = #tpu.pipeline_mode<synchronous>, transform_indices = @transform_5, window_bounds = array<i64: 32, 32>}, {pipeline_mode = #tpu.pipeline_mode<synchronous>, transform_indices = @transform_6, window_bounds = array<i64: 32, 1>}, {pipeline_mode = #tpu.pipeline_mode<synchronous>, transform_indices = @transform_7, window_bounds = array<i64: 32, 32>}, {pipeline_mode = #tpu.pipeline_mode<synchronous>, transform_indices = @transform_8, window_bounds = array<i64: 32, 1>}, {transform_indices = @transform_9, window_bounds = array<i64: 1, 32, 128>}, {transform_indices = @transform_10, window_bounds = array<i64: 1, 128, 32>}, {transform_indices = @transform_11, window_bounds = array<i64: 1, 32, 128>}]} {
    %c0 = arith.constant 0 : index
    %c0_0 = arith.constant 0 : index
    %c0_1 = arith.constant 0 : index
    %0 = vector.load %arg2[%c0, %c0_0, %c0_1] : memref<1x32x128xf32, #tpu.memory_space<vmem>>, vector<1x32x128xf32>
    %1 = vector.shape_cast %0 : vector<1x32x128xf32> to vector<32x128xf32>
    %c0_2 = arith.constant 0 : index
    %c0_3 = arith.constant 0 : index
    %c0_4 = arith.constant 0 : index
    %2 = vector.load %arg3[%c0_2, %c0_3, %c0_4] : memref<1x32x1xf32, #tpu.memory_space<vmem>>, vector<1x32x1xf32>
    %3 = vector.shape_cast %2 : vector<1x32x1xf32> to vector<32x1xf32>
    %4 = vector.broadcast %3 : vector<32x1xf32> to vector<32x128xf32>
    %5 = arith.mulf %1, %4 : vector<32x128xf32>
    %c0_5 = arith.constant 0 : index
    %c0_6 = arith.constant 0 : index
    %c0_7 = arith.constant 0 : index
    %6 = vector.load %arg4[%c0_5, %c0_6, %c0_7] : memref<1x32x1xf32, #tpu.memory_space<vmem>>, vector<1x32x1xf32>
    %7 = vector.shape_cast %6 : vector<1x32x1xf32> to vector<32x1xf32>
    %8 = vector.broadcast %7 : vector<32x1xf32> to vector<32x128xf32>
    %9 = arith.addf %5, %8 : vector<32x128xf32>
    %10 = arith.truncf %9 : vector<32x128xf32> to vector<32x128xbf16>
    %c0_8 = arith.constant 0 : index
    %c0_9 = arith.constant 0 : index
    %11 = vector.load %arg5[%c0_8, %c0_9] : memref<32x32xbf16, #tpu.memory_space<vmem>>, vector<32x32xbf16>
    %cst = arith.constant dense<0.000000e+00> : vector<32x128xf32>
    %12 = tpu.matmul %11, %10, %cst {dimension_numbers = #tpu.dot_dimension_numbers<[1], [0], [0], [1], [0, 0, 1, 1], [], []>} : vector<32x32xbf16>, vector<32x128xbf16>, vector<32x128xf32> -> vector<32x128xf32>
    %c0_10 = arith.constant 0 : index
    %c0_11 = arith.constant 0 : index
    %13 = vector.load %arg6[%c0_10, %c0_11] : memref<32x1xf32, #tpu.memory_space<vmem>>, vector<32x1xf32>
    %14 = vector.broadcast %13 : vector<32x1xf32> to vector<32x128xf32>
    %15 = arith.addf %12, %14 : vector<32x128xf32>
    %16 = arith.truncf %15 : vector<32x128xf32> to vector<32x128xbf16>
    %c0_12 = arith.constant 0 : index
    %c0_13 = arith.constant 0 : index
    %c0_14 = arith.constant 0 : index
    %17 = vector.load %arg11[%c0_12, %c0_13, %c0_14] : memref<1x32x128xbf16, #tpu.memory_space<vmem>>, vector<1x32x128xbf16>
    %18 = vector.shape_cast %17 : vector<1x32x128xbf16> to vector<32x128xbf16>
    %19 = vector.shape_cast %16 : vector<32x128xbf16> to vector<1x32x128xbf16>
    tpu.vector_store %arg11[%c0_12, %c0_13, %c0_14], %19 {strides = array<i32>} : memref<1x32x128xbf16, #tpu.memory_space<vmem>>, vector<1x32x128xbf16>,
    %c0_15 = arith.constant 0 : index
    %c0_16 = arith.constant 0 : index
    %20 = vector.load %arg9[%c0_15, %c0_16] : memref<32x32xbf16, #tpu.memory_space<vmem>>, vector<32x32xbf16>
    %cst_17 = arith.constant dense<0.000000e+00> : vector<32x128xf32>
    %21 = tpu.matmul %20, %10, %cst_17 {dimension_numbers = #tpu.dot_dimension_numbers<[1], [0], [0], [1], [0, 0, 1, 1], [], []>} : vector<32x32xbf16>, vector<32x128xbf16>, vector<32x128xf32> -> vector<32x128xf32>
    %c0_18 = arith.constant 0 : index
    %c0_19 = arith.constant 0 : index
    %22 = vector.load %arg10[%c0_18, %c0_19] : memref<32x1xf32, #tpu.memory_space<vmem>>, vector<32x1xf32>
    %23 = vector.broadcast %22 : vector<32x1xf32> to vector<32x128xf32>
    %24 = arith.addf %21, %23 : vector<32x128xf32>
    %25 = arith.truncf %24 : vector<32x128xf32> to vector<32x128xbf16>
    %c0_20 = arith.constant 0 : index
    %c0_21 = arith.constant 0 : index
    %c0_22 = arith.constant 0 : index
    %26 = vector.load %arg13[%c0_20, %c0_21, %c0_22] : memref<1x32x128xbf16, #tpu.memory_space<vmem>>, vector<1x32x128xbf16>
    %27 = vector.shape_cast %26 : vector<1x32x128xbf16> to vector<32x128xbf16>
    %28 = vector.shape_cast %25 : vector<32x128xbf16> to vector<1x32x128xbf16>
    tpu.vector_store %arg13[%c0_20, %c0_21, %c0_22], %28 {strides = array<i32>} : memref<1x32x128xbf16, #tpu.memory_space<vmem>>, vector<1x32x128xbf16>,
    %c0_23 = arith.constant 0 : index
    %c0_24 = arith.constant 0 : index
    %29 = vector.load %arg7[%c0_23, %c0_24] : memref<32x32xbf16, #tpu.memory_space<vmem>>, vector<32x32xbf16>
    %cst_25 = arith.constant dense<0.000000e+00> : vector<32x128xf32>
    %30 = tpu.matmul %29, %10, %cst_25 {dimension_numbers = #tpu.dot_dimension_numbers<[1], [0], [0], [1], [0, 0, 1, 1], [], []>} : vector<32x32xbf16>, vector<32x128xbf16>, vector<32x128xf32> -> vector<32x128xf32>
    %c0_26 = arith.constant 0 : index
    %c0_27 = arith.constant 0 : index
    %31 = vector.load %arg8[%c0_26, %c0_27] : memref<32x1xf32, #tpu.memory_space<vmem>>, vector<32x1xf32>
    %32 = vector.broadcast %31 : vector<32x1xf32> to vector<32x128xf32>
    %33 = arith.addf %30, %32 : vector<32x128xf32>
    %34 = tpu.transpose %33, [1, 0] : vector<32x128xf32> -> vector<128x32xf32>
    %35 = arith.truncf %34 : vector<128x32xf32> to vector<128x32xbf16>
    %c0_28 = arith.constant 0 : index
    %c0_29 = arith.constant 0 : index
    %c0_30 = arith.constant 0 : index
    %36 = vector.load %arg12[%c0_28, %c0_29, %c0_30] : memref<1x128x32xbf16, #tpu.memory_space<vmem>>, vector<1x128x32xbf16>
    %37 = vector.shape_cast %36 : vector<1x128x32xbf16> to vector<128x32xbf16>
    %38 = vector.shape_cast %35 : vector<128x32xbf16> to vector<1x128x32xbf16>
    tpu.vector_store %arg12[%c0_28, %c0_29, %c0_30], %38 {strides = array<i32>} : memref<1x128x32xbf16, #tpu.memory_space<vmem>>, vector<1x128x32xbf16>,
    return
  }
  func.func @transform_0(%arg0: i32, %arg1: i32) -> (i32, i32, i32) {
    %c0_i32 = arith.constant 0 : i32
    %c0_i32_0 = arith.constant 0 : i32
    return %arg0, %c0_i32, %arg1 : i32, i32, i32
  }
  func.func @transform_1(%arg0: i32, %arg1: i32) -> (i32, i32, i32) {
    %c0_i32 = arith.constant 0 : i32
    %c0_i32_0 = arith.constant 0 : i32
    %c0_i32_1 = arith.constant 0 : i32
    return %arg0, %c0_i32, %c0_i32_0 : i32, i32, i32
  }
  func.func @transform_2(%arg0: i32, %arg1: i32) -> (i32, i32, i32) {
    %c0_i32 = arith.constant 0 : i32
    %c0_i32_0 = arith.constant 0 : i32
    %c0_i32_1 = arith.constant 0 : i32
    return %arg0, %c0_i32, %c0_i32_0 : i32, i32, i32
  }
  func.func @transform_3(%arg0: i32, %arg1: i32) -> (i32, i32) {
    %c0_i32 = arith.constant 0 : i32
    %c0_i32_0 = arith.constant 0 : i32
    %c0_i32_1 = arith.constant 0 : i32
    return %c0_i32, %c0_i32_0 : i32, i32
  }
  func.func @transform_4(%arg0: i32, %arg1: i32) -> (i32, i32) {
    %c0_i32 = arith.constant 0 : i32
    %c0_i32_0 = arith.constant 0 : i32
    %c0_i32_1 = arith.constant 0 : i32
    return %c0_i32, %c0_i32_0 : i32, i32
  }
  func.func @transform_5(%arg0: i32, %arg1: i32) -> (i32, i32) {
    %c0_i32 = arith.constant 0 : i32
    %c0_i32_0 = arith.constant 0 : i32
    %c0_i32_1 = arith.constant 0 : i32
    return %c0_i32, %c0_i32_0 : i32, i32
  }
  func.func @transform_6(%arg0: i32, %arg1: i32) -> (i32, i32) {
    %c0_i32 = arith.constant 0 : i32
    %c0_i32_0 = arith.constant 0 : i32
    %c0_i32_1 = arith.constant 0 : i32
    return %c0_i32, %c0_i32_0 : i32, i32
  }
  func.func @transform_7(%arg0: i32, %arg1: i32) -> (i32, i32) {
    %c0_i32 = arith.constant 0 : i32
    %c0_i32_0 = arith.constant 0 : i32
    %c0_i32_1 = arith.constant 0 : i32
    return %c0_i32, %c0_i32_0 : i32, i32
  }
  func.func @transform_8(%arg0: i32, %arg1: i32) -> (i32, i32) {
    %c0_i32 = arith.constant 0 : i32
    %c0_i32_0 = arith.constant 0 : i32
    %c0_i32_1 = arith.constant 0 : i32
    return %c0_i32, %c0_i32_0 : i32, i32
  }
  func.func @transform_9(%arg0: i32, %arg1: i32) -> (i32, i32, i32) {
    %c0_i32 = arith.constant 0 : i32
    %c0_i32_0 = arith.constant 0 : i32
    return %arg0, %c0_i32, %arg1 : i32, i32, i32
  }
  func.func @transform_10(%arg0: i32, %arg1: i32) -> (i32, i32, i32) {
    %c0_i32 = arith.constant 0 : i32
    %c0_i32_0 = arith.constant 0 : i32
    return %arg0, %arg1, %c0_i32 : i32, i32, i32
  }
  func.func @transform_11(%arg0: i32, %arg1: i32) -> (i32, i32, i32) {
    %c0_i32 = arith.constant 0 : i32
    %c0_i32_0 = arith.constant 0 : i32
    return %arg0, %c0_i32, %arg1 : i32, i32, i32
  }
}

module attributes {stable_mosaic.version = 11 : i64} {
  func.func @kernel(%arg0: i32, %arg1: i32, %arg2: memref<1x32x256xf32, #tpu.memory_space<vmem>>, %arg3: memref<1x32x256xbf16, #tpu.memory_space<vmem>>, %arg4: memref<1x128x32xbf16, #tpu.memory_space<vmem>>, %arg5: memref<1x32x128xbf16, #tpu.memory_space<vmem>>, %arg6: memref<32x32xbf16, #tpu.memory_space<vmem>>, %arg7: memref<32x1xf32, #tpu.memory_space<vmem>>, %arg8: memref<1x32x256xf32, #tpu.memory_space<vmem>>, %arg9: memref<1x256xf32, #tpu.memory_space<vmem>>, %arg10: memref<1x256xf32, #tpu.memory_space<vmem>>, %arg11: memref<32x256xf32, #tpu.memory_space<vmem>>) attributes {dimension_semantics = [#tpu.dimension_semantics<parallel>, #tpu.dimension_semantics<arbitrary>], iteration_bounds = array<i64: 2, 2>, scalar_prefetch = 0 : i64, scratch_operands = 3 : i64, tpu.core_type = #tpu.core_type<tc>, window_params = [{transform_indices = @transform_0, window_bounds = array<i64: 1, 32, 256>}, {transform_indices = @transform_1, window_bounds = array<i64: 1, 32, 256>}, {transform_indices = @transform_2, window_bounds = array<i64: 1, 128, 32>}, {transform_indices = @transform_3, window_bounds = array<i64: 1, 32, 128>}, {pipeline_mode = #tpu.pipeline_mode<synchronous>, transform_indices = @transform_4, window_bounds = array<i64: 32, 32>}, {pipeline_mode = #tpu.pipeline_mode<synchronous>, transform_indices = @transform_5, window_bounds = array<i64: 32, 1>}, {transform_indices = @transform_6, window_bounds = array<i64: 1, 32, 256>}]} {
    %c0_i32 = arith.constant 0 : i32
    %0 = arith.cmpi eq, %arg1, %c0_i32 : i32
    %1 = arith.extui %0 : i1 to i32
    %c0_i32_0 = arith.constant 0 : i32
    %2 = arith.cmpi ne, %1, %c0_i32_0 : i32
    scf.if %2 {
      %cst_43 = arith.constant 0xFF800000 : f32
      %62 = vector.broadcast %cst_43 : f32 to vector<1x256xf32>
      %c0_44 = arith.constant 0 : index
      %c0_45 = arith.constant 0 : index
      %63 = vector.load %arg9[%c0_44, %c0_45] : memref<1x256xf32, #tpu.memory_space<vmem>>, vector<1x256xf32>
      tpu.vector_store %arg9[%c0_44, %c0_45], %62 {strides = array<i32>} : memref<1x256xf32, #tpu.memory_space<vmem>>, vector<1x256xf32>,
      %cst_46 = arith.constant 0.000000e+00 : f32
      %64 = vector.broadcast %cst_46 : f32 to vector<1x256xf32>
      %c0_47 = arith.constant 0 : index
      %c0_48 = arith.constant 0 : index
      %65 = vector.load %arg10[%c0_47, %c0_48] : memref<1x256xf32, #tpu.memory_space<vmem>>, vector<1x256xf32>
      tpu.vector_store %arg10[%c0_47, %c0_48], %64 {strides = array<i32>} : memref<1x256xf32, #tpu.memory_space<vmem>>, vector<1x256xf32>,
      %cst_49 = arith.constant 0.000000e+00 : f32
      %66 = vector.broadcast %cst_49 : f32 to vector<32x256xf32>
      %c0_50 = arith.constant 0 : index
      %c0_51 = arith.constant 0 : index
      %67 = vector.load %arg11[%c0_50, %c0_51] : memref<32x256xf32, #tpu.memory_space<vmem>>, vector<32x256xf32>
      tpu.vector_store %arg11[%c0_50, %c0_51], %66 {strides = array<i32>} : memref<32x256xf32, #tpu.memory_space<vmem>>, vector<32x256xf32>,
    } else {
    }
    %c0 = arith.constant 0 : index
    %c0_1 = arith.constant 0 : index
    %c0_2 = arith.constant 0 : index
    %3 = vector.load %arg4[%c0, %c0_1, %c0_2] : memref<1x128x32xbf16, #tpu.memory_space<vmem>>, vector<1x128x32xbf16>
    %4 = vector.shape_cast %3 : vector<1x128x32xbf16> to vector<128x32xbf16>
    %c0_3 = arith.constant 0 : index
    %c0_4 = arith.constant 0 : index
    %c0_5 = arith.constant 0 : index
    %5 = vector.load %arg5[%c0_3, %c0_4, %c0_5] : memref<1x32x128xbf16, #tpu.memory_space<vmem>>, vector<1x32x128xbf16>
    %6 = vector.shape_cast %5 : vector<1x32x128xbf16> to vector<32x128xbf16>
    %c0_6 = arith.constant 0 : index
    %c0_7 = arith.constant 0 : index
    %c0_8 = arith.constant 0 : index
    %7 = vector.load %arg3[%c0_6, %c0_7, %c0_8] : memref<1x32x256xbf16, #tpu.memory_space<vmem>>, vector<1x32x128xbf16>
    %8 = vector.shape_cast %7 : vector<1x32x128xbf16> to vector<32x128xbf16>
    %cst = arith.constant dense<0.000000e+00> : vector<128x128xf32>
    %9 = tpu.matmul %4, %8, %cst {dimension_numbers = #tpu.dot_dimension_numbers<[1], [0], [0], [1], [0, 0, 1, 1], [], []>} : vector<128x32xbf16>, vector<32x128xbf16>, vector<128x128xf32> -> vector<128x128xf32>
    %c0_9 = arith.constant 0 : index
    %c0_10 = arith.constant 0 : index
    %10 = vector.load %arg9[%c0_9, %c0_10] : memref<1x256xf32, #tpu.memory_space<vmem>>, vector<1x128xf32>
    %cst_11 = arith.constant dense<0xFF800000> : vector<128xf32>
    %11 = vector.multi_reduction <maximumf>, %9, %cst_11 [0] : vector<128x128xf32> to vector<128xf32>
    %12 = vector.shape_cast %11 : vector<128xf32> to vector<1x128xf32>
    %13 = arith.maximumf %10, %12 : vector<1x128xf32>
    %14 = arith.subf %10, %13 : vector<1x128xf32>
    %15 = math.exp %14 : vector<1x128xf32>
    %16 = vector.broadcast %13 : vector<1x128xf32> to vector<128x128xf32>
    %17 = arith.subf %9, %16 : vector<128x128xf32>
    %18 = math.exp %17 : vector<128x128xf32>
    %c0_12 = arith.constant 0 : index
    %c0_13 = arith.constant 0 : index
    %19 = vector.load %arg10[%c0_12, %c0_13] : memref<1x256xf32, #tpu.memory_space<vmem>>, vector<1x128xf32>
    %20 = arith.mulf %15, %19 : vector<1x128xf32>
    %cst_14 = arith.constant dense<0.000000e+00> : vector<128xf32>
    %21 = vector.multi_reduction <add>, %18, %cst_14 [0] : vector<128x128xf32> to vector<128xf32>
    %22 = vector.shape_cast %21 : vector<128xf32> to vector<1x128xf32>
    %23 = arith.addf %20, %22 : vector<1x128xf32>
    %c0_15 = arith.constant 0 : index
    %c0_16 = arith.constant 0 : index
    %24 = vector.load %arg10[%c0_15, %c0_16] : memref<1x256xf32, #tpu.memory_space<vmem>>, vector<1x128xf32>
    tpu.vector_store %arg10[%c0_15, %c0_16], %23 {strides = array<i32>} : memref<1x256xf32, #tpu.memory_space<vmem>>, vector<1x128xf32>,
    %c0_17 = arith.constant 0 : index
    %c0_18 = arith.constant 0 : index
    %25 = vector.load %arg11[%c0_17, %c0_18] : memref<32x256xf32, #tpu.memory_space<vmem>>, vector<32x128xf32>
    %26 = vector.broadcast %15 : vector<1x128xf32> to vector<32x128xf32>
    %27 = arith.mulf %26, %25 : vector<32x128xf32>
    %28 = arith.truncf %18 : vector<128x128xf32> to vector<128x128xbf16>
    %cst_19 = arith.constant dense<0.000000e+00> : vector<32x128xf32>
    %29 = tpu.matmul %6, %28, %cst_19 {dimension_numbers = #tpu.dot_dimension_numbers<[1], [0], [0], [1], [0, 0, 1, 1], [], []>} : vector<32x128xbf16>, vector<128x128xbf16>, vector<32x128xf32> -> vector<32x128xf32>
    %30 = arith.addf %27, %29 : vector<32x128xf32>
    %c0_20 = arith.constant 0 : index
    %c0_21 = arith.constant 0 : index
    %31 = vector.load %arg11[%c0_20, %c0_21] : memref<32x256xf32, #tpu.memory_space<vmem>>, vector<32x128xf32>
    tpu.vector_store %arg11[%c0_20, %c0_21], %30 {strides = array<i32>} : memref<32x256xf32, #tpu.memory_space<vmem>>, vector<32x128xf32>,
    %c0_22 = arith.constant 0 : index
    %c0_23 = arith.constant 0 : index
    %32 = vector.load %arg9[%c0_22, %c0_23] : memref<1x256xf32, #tpu.memory_space<vmem>>, vector<1x128xf32>
    tpu.vector_store %arg9[%c0_22, %c0_23], %13 {strides = array<i32>} : memref<1x256xf32, #tpu.memory_space<vmem>>, vector<1x128xf32>,
    %c0_24 = arith.constant 0 : index
    %c0_25 = arith.constant 0 : index
    %c128 = arith.constant 128 : index
    %33 = vector.load %arg3[%c0_24, %c0_25, %c128] : memref<1x32x256xbf16, #tpu.memory_space<vmem>>, vector<1x32x128xbf16>
    %34 = vector.shape_cast %33 : vector<1x32x128xbf16> to vector<32x128xbf16>
    %cst_26 = arith.constant dense<0.000000e+00> : vector<128x128xf32>
    %35 = tpu.matmul %4, %34, %cst_26 {dimension_numbers = #tpu.dot_dimension_numbers<[1], [0], [0], [1], [0, 0, 1, 1], [], []>} : vector<128x32xbf16>, vector<32x128xbf16>, vector<128x128xf32> -> vector<128x128xf32>
    %c0_27 = arith.constant 0 : index
    %c128_28 = arith.constant 128 : index
    %36 = vector.load %arg9[%c0_27, %c128_28] : memref<1x256xf32, #tpu.memory_space<vmem>>, vector<1x128xf32>
    %cst_29 = arith.constant dense<0xFF800000> : vector<128xf32>
    %37 = vector.multi_reduction <maximumf>, %35, %cst_29 [0] : vector<128x128xf32> to vector<128xf32>
    %38 = vector.shape_cast %37 : vector<128xf32> to vector<1x128xf32>
    %39 = arith.maximumf %36, %38 : vector<1x128xf32>
    %40 = arith.subf %36, %39 : vector<1x128xf32>
    %41 = math.exp %40 : vector<1x128xf32>
    %42 = vector.broadcast %39 : vector<1x128xf32> to vector<128x128xf32>
    %43 = arith.subf %35, %42 : vector<128x128xf32>
    %44 = math.exp %43 : vector<128x128xf32>
    %c0_30 = arith.constant 0 : index
    %c128_31 = arith.constant 128 : index
    %45 = vector.load %arg10[%c0_30, %c128_31] : memref<1x256xf32, #tpu.memory_space<vmem>>, vector<1x128xf32>
    %46 = arith.mulf %41, %45 : vector<1x128xf32>
    %cst_32 = arith.constant dense<0.000000e+00> : vector<128xf32>
    %47 = vector.multi_reduction <add>, %44, %cst_32 [0] : vector<128x128xf32> to vector<128xf32>
    %48 = vector.shape_cast %47 : vector<128xf32> to vector<1x128xf32>
    %49 = arith.addf %46, %48 : vector<1x128xf32>
    %c0_33 = arith.constant 0 : index
    %c128_34 = arith.constant 128 : index
    %50 = vector.load %arg10[%c0_33, %c128_34] : memref<1x256xf32, #tpu.memory_space<vmem>>, vector<1x128xf32>
    tpu.vector_store %arg10[%c0_33, %c128_34], %49 {strides = array<i32>} : memref<1x256xf32, #tpu.memory_space<vmem>>, vector<1x128xf32>,
    %c0_35 = arith.constant 0 : index
    %c128_36 = arith.constant 128 : index
    %51 = vector.load %arg11[%c0_35, %c128_36] : memref<32x256xf32, #tpu.memory_space<vmem>>, vector<32x128xf32>
    %52 = vector.broadcast %41 : vector<1x128xf32> to vector<32x128xf32>
    %53 = arith.mulf %52, %51 : vector<32x128xf32>
    %54 = arith.truncf %44 : vector<128x128xf32> to vector<128x128xbf16>
    %cst_37 = arith.constant dense<0.000000e+00> : vector<32x128xf32>
    %55 = tpu.matmul %6, %54, %cst_37 {dimension_numbers = #tpu.dot_dimension_numbers<[1], [0], [0], [1], [0, 0, 1, 1], [], []>} : vector<32x128xbf16>, vector<128x128xbf16>, vector<32x128xf32> -> vector<32x128xf32>
    %56 = arith.addf %53, %55 : vector<32x128xf32>
    %c0_38 = arith.constant 0 : index
    %c128_39 = arith.constant 128 : index
    %57 = vector.load %arg11[%c0_38, %c128_39] : memref<32x256xf32, #tpu.memory_space<vmem>>, vector<32x128xf32>
    tpu.vector_store %arg11[%c0_38, %c128_39], %56 {strides = array<i32>} : memref<32x256xf32, #tpu.memory_space<vmem>>, vector<32x128xf32>,
    %c0_40 = arith.constant 0 : index
    %c128_41 = arith.constant 128 : index
    %58 = vector.load %arg9[%c0_40, %c128_41] : memref<1x256xf32, #tpu.memory_space<vmem>>, vector<1x128xf32>
    tpu.vector_store %arg9[%c0_40, %c128_41], %39 {strides = array<i32>} : memref<1x256xf32, #tpu.memory_space<vmem>>, vector<1x128xf32>,
    %c1_i32 = arith.constant 1 : i32
    %59 = arith.cmpi eq, %arg1, %c1_i32 : i32
    %60 = arith.extui %59 : i1 to i32
    %c0_i32_42 = arith.constant 0 : i32
    %61 = arith.cmpi ne, %60, %c0_i32_42 : i32
    scf.if %61 {
      %c0_43 = arith.constant 0 : index
      %c0_44 = arith.constant 0 : index
      %62 = vector.load %arg10[%c0_43, %c0_44] : memref<1x256xf32, #tpu.memory_space<vmem>>, vector<1x128xf32>
      %63 = tpu.reciprocal %62 : vector<1x128xf32> -> vector<1x128xf32>
      %c0_45 = arith.constant 0 : index
      %c0_46 = arith.constant 0 : index
      %64 = vector.load %arg11[%c0_45, %c0_46] : memref<32x256xf32, #tpu.memory_space<vmem>>, vector<32x128xf32>
      %65 = vector.broadcast %63 : vector<1x128xf32> to vector<32x128xf32>
      %66 = arith.mulf %64, %65 : vector<32x128xf32>
      %67 = arith.truncf %66 : vector<32x128xf32> to vector<32x128xbf16>
      %c0_47 = arith.constant 0 : index
      %c0_48 = arith.constant 0 : index
      %68 = vector.load %arg6[%c0_47, %c0_48] : memref<32x32xbf16, #tpu.memory_space<vmem>>, vector<32x32xbf16>
      %cst_49 = arith.constant dense<0.000000e+00> : vector<32x128xf32>
      %69 = tpu.matmul %68, %67, %cst_49 {dimension_numbers = #tpu.dot_dimension_numbers<[1], [0], [0], [1], [0, 0, 1, 1], [], []>} : vector<32x32xbf16>, vector<32x128xbf16>, vector<32x128xf32> -> vector<32x128xf32>
      %c0_50 = arith.constant 0 : index
      %c0_51 = arith.constant 0 : index
      %70 = vector.load %arg7[%c0_50, %c0_51] : memref<32x1xf32, #tpu.memory_space<vmem>>, vector<32x1xf32>
      %71 = vector.broadcast %70 : vector<32x1xf32> to vector<32x128xf32>
      %72 = arith.addf %69, %71 : vector<32x128xf32>
      %c0_52 = arith.constant 0 : index
      %c0_53 = arith.constant 0 : index
      %c0_54 = arith.constant 0 : index
      %73 = vector.load %arg2[%c0_52, %c0_53, %c0_54] : memref<1x32x256xf32, #tpu.memory_space<vmem>>, vector<1x32x128xf32>
      %74 = vector.shape_cast %73 : vector<1x32x128xf32> to vector<32x128xf32>
      %75 = arith.addf %74, %72 : vector<32x128xf32>
      %c0_55 = arith.constant 0 : index
      %c0_56 = arith.constant 0 : index
      %c0_57 = arith.constant 0 : index
      %76 = vector.load %arg8[%c0_55, %c0_56, %c0_57] : memref<1x32x256xf32, #tpu.memory_space<vmem>>, vector<1x32x128xf32>
      %77 = vector.shape_cast %76 : vector<1x32x128xf32> to vector<32x128xf32>
      %78 = vector.shape_cast %75 : vector<32x128xf32> to vector<1x32x128xf32>
      tpu.vector_store %arg8[%c0_55, %c0_56, %c0_57], %78 {strides = array<i32>} : memref<1x32x256xf32, #tpu.memory_space<vmem>>, vector<1x32x128xf32>,
      %c0_58 = arith.constant 0 : index
      %c128_59 = arith.constant 128 : index
      %79 = vector.load %arg10[%c0_58, %c128_59] : memref<1x256xf32, #tpu.memory_space<vmem>>, vector<1x128xf32>
      %80 = tpu.reciprocal %79 : vector<1x128xf32> -> vector<1x128xf32>
      %c0_60 = arith.constant 0 : index
      %c128_61 = arith.constant 128 : index
      %81 = vector.load %arg11[%c0_60, %c128_61] : memref<32x256xf32, #tpu.memory_space<vmem>>, vector<32x128xf32>
      %82 = vector.broadcast %80 : vector<1x128xf32> to vector<32x128xf32>
      %83 = arith.mulf %81, %82 : vector<32x128xf32>
      %84 = arith.truncf %83 : vector<32x128xf32> to vector<32x128xbf16>
      %c0_62 = arith.constant 0 : index
      %c0_63 = arith.constant 0 : index
      %85 = vector.load %arg6[%c0_62, %c0_63] : memref<32x32xbf16, #tpu.memory_space<vmem>>, vector<32x32xbf16>
      %cst_64 = arith.constant dense<0.000000e+00> : vector<32x128xf32>
      %86 = tpu.matmul %85, %84, %cst_64 {dimension_numbers = #tpu.dot_dimension_numbers<[1], [0], [0], [1], [0, 0, 1, 1], [], []>} : vector<32x32xbf16>, vector<32x128xbf16>, vector<32x128xf32> -> vector<32x128xf32>
      %c0_65 = arith.constant 0 : index
      %c0_66 = arith.constant 0 : index
      %87 = vector.load %arg7[%c0_65, %c0_66] : memref<32x1xf32, #tpu.memory_space<vmem>>, vector<32x1xf32>
      %88 = vector.broadcast %87 : vector<32x1xf32> to vector<32x128xf32>
      %89 = arith.addf %86, %88 : vector<32x128xf32>
      %c0_67 = arith.constant 0 : index
      %c0_68 = arith.constant 0 : index
      %c128_69 = arith.constant 128 : index
      %90 = vector.load %arg2[%c0_67, %c0_68, %c128_69] : memref<1x32x256xf32, #tpu.memory_space<vmem>>, vector<1x32x128xf32>
      %91 = vector.shape_cast %90 : vector<1x32x128xf32> to vector<32x128xf32>
      %92 = arith.addf %91, %89 : vector<32x128xf32>
      %c0_70 = arith.constant 0 : index
      %c0_71 = arith.constant 0 : index
      %c128_72 = arith.constant 128 : index
      %93 = vector.load %arg8[%c0_70, %c0_71, %c128_72] : memref<1x32x256xf32, #tpu.memory_space<vmem>>, vector<1x32x128xf32>
      %94 = vector.shape_cast %93 : vector<1x32x128xf32> to vector<32x128xf32>
      %95 = vector.shape_cast %92 : vector<32x128xf32> to vector<1x32x128xf32>
      tpu.vector_store %arg8[%c0_70, %c0_71, %c128_72], %95 {strides = array<i32>} : memref<1x32x256xf32, #tpu.memory_space<vmem>>, vector<1x32x128xf32>,
    } else {
    }
    return
  }
  func.func @transform_0(%arg0: i32, %arg1: i32) -> (i32, i32, i32) {
    %c0_i32 = arith.constant 0 : i32
    %c0_i32_0 = arith.constant 0 : i32
    %c0_i32_1 = arith.constant 0 : i32
    return %arg0, %c0_i32, %c0_i32_0 : i32, i32, i32
  }
  func.func @transform_1(%arg0: i32, %arg1: i32) -> (i32, i32, i32) {
    %c0_i32 = arith.constant 0 : i32
    %c0_i32_0 = arith.constant 0 : i32
    %c0_i32_1 = arith.constant 0 : i32
    return %arg0, %c0_i32, %c0_i32_0 : i32, i32, i32
  }
  func.func @transform_2(%arg0: i32, %arg1: i32) -> (i32, i32, i32) {
    %c0_i32 = arith.constant 0 : i32
    %c0_i32_0 = arith.constant 0 : i32
    return %arg0, %arg1, %c0_i32 : i32, i32, i32
  }
  func.func @transform_3(%arg0: i32, %arg1: i32) -> (i32, i32, i32) {
    %c0_i32 = arith.constant 0 : i32
    %c0_i32_0 = arith.constant 0 : i32
    return %arg0, %c0_i32, %arg1 : i32, i32, i32
  }
  func.func @transform_4(%arg0: i32, %arg1: i32) -> (i32, i32) {
    %c0_i32 = arith.constant 0 : i32
    %c0_i32_0 = arith.constant 0 : i32
    %c0_i32_1 = arith.constant 0 : i32
    return %c0_i32, %c0_i32_0 : i32, i32
  }
  func.func @transform_5(%arg0: i32, %arg1: i32) -> (i32, i32) {
    %c0_i32 = arith.constant 0 : i32
    %c0_i32_0 = arith.constant 0 : i32
    %c0_i32_1 = arith.constant 0 : i32
    return %c0_i32, %c0_i32_0 : i32, i32
  }
  func.func @transform_6(%arg0: i32, %arg1: i32) -> (i32, i32, i32) {
    %c0_i32 = arith.constant 0 : i32
    %c0_i32_0 = arith.constant 0 : i32
    %c0_i32_1 = arith.constant 0 : i32
    return %arg0, %c0_i32, %c0_i32_0 : i32, i32, i32
  }
}

</mosaic_0001>

<bundles_post_ra>
// kernel: memory_efficient_attn_block.2
= control target key start
LH: loop header
LB: loop body
LE: loop exit
PB: predicated region body
PF: predicated region fallthrough
CT: control target
= control target key end

     0   :  { %s1881_s0 = inlined_call_operand.vmem [shape: f32[2,32,256], index: 0, kind: input, shape index: {}]   ;;  %s1882_s1 = inlined_call_operand.vmem [shape: f32[2,32,1], index: 1, kind: input, shape index: {}]   ;;  %s1883_s2 = inlined_call_operand.vmem [shape: f32[2,32,1], index: 2, kind: input, shape index: {}]   ;;  %s1884_s3 = inlined_call_operand.vmem [shape: bf16[32,32], index: 3, kind: input, shape index: {}]   ;;  %s1885_s4 = inlined_call_operand.vmem [shape: f32[32,1], index: 4, kind: input, shape index: {}]   ;;  %s1886_s5 = inlined_call_operand.vmem [shape: bf16[32,32], index: 5, kind: input, shape index: {}]   ;;  %s1887_s6 = inlined_call_operand.vmem [shape: f32[32,1], index: 6, kind: input, shape index: {}]   ;;  %s1888_s7 = inlined_call_operand.vmem [shape: bf16[32,32], index: 7, kind: input, shape index: {}]   ;;  %s1889_s8 = inlined_call_operand.vmem [shape: f32[32,1], index: 8, kind: input, shape index: {}]   ;;  %s1890_s9 = inlined_call_operand.vmem [shape: bf16[2,32,256], index: 9, kind: output, shape index: {0}]   ;;  %s1891_s10 = inlined_call_operand.vmem [shape: bf16[2,256,32], index: 10, kind: output, shape index: {1}]   ;;  %s1892_s11 = inlined_call_operand.vmem [shape: bf16[2,32,256], index: 11, kind: output, shape index: {2}]  }
   0x1   :  { %1894 = sst [smem:[#allocation6_spill]] %s1890_s9 }
   0x2   :  { %1895 = sst [smem:[#allocation7_spill]] %s1892_s11 }
   0x3   :  { %s1647_s17 = smov 0   ;;  %s1649_s18 = smov 0  }
   0x4   :  { %s1651_s19 = smov 0   ;;  %s1653_s20 = smov 0  }
   0x5   :  { %s1655_s21 = smov 0   ;;  %s1657_s22 = smov 0  }
   0x6   :  { %s1659_s23 = smov 0  }
   0x7 LB: > { %s31_s24 = sadd.s32 1, %s1576_s21  ;;  %s34_s25 = sadd.s32 1, %s1580_s22  ;;  %s1584_s23 = sphi %s1659_s23, %s22_s23   ;;  %s1580_s22 = sphi %s1657_s22, %s1906_s22   ;;  %s1576_s21 = sphi %s1655_s21, %s1905_s21   ;;  %s1572_s20 = sphi %s1653_s20, %s1904_s20   ;;  %s1568_s19 = sphi %s1651_s19, %s1903_s19   ;;  %s1564_s18 = sphi %s1649_s18, %s1902_s18   ;;  %s1560_s17 = sphi %s1647_s17, %s1901_s17  }
   0x8   : > { %p32_p0 = scmp.ge.s32.totalorder %s31_s24, 2  ;;  %s1318_s26 = sadd.s32 4294967295, %s1584_s23  }
   0x9   : > { %p50_p1 = scmp.ne.s32.totalorder %s1564_s18, %s1560_s17  ;;  %p51_p2 = scmp.eq.s32.totalorder %s1584_s23, 0 }
   0xa   : > { %s1908_s24 = smov (%p32_p0, %s31_s24), 0  ;;  %s1910_s25 = smov (!%p32_p0, %s34_s25), %s1580_s22 }
   0xb   : > { %1896 = sst [smem:[#allocation5_spill]] %s1908_s24  ;;  %p36_p3 = scmp.ge.s32.totalorder %s1910_s25, 2 }
   0xc   : > { %p260_p4 = scmp.eq.s32.totalorder %s1318_s26, 3  ;;  %s39_s27 = ssub.s32 %s1576_s21, %s1908_s24 }
   0xd   : > { %p52_p5 = por %p51_p2, %p50_p1  ;;  %s1912_s25 = smov (%p36_p3, %s1910_s25), 0 }
   0xe   : > { %p1695_p6 = por %p260_p4, %p50_p1  ;;  %s38_s29 = ssub.s32 %s1580_s22, %s1912_s25 }
   0xf   : > { %s40_s30 = sor.u32 %s39_s27, %s38_s29  ;;  %s43_s12 = sadd.s32 1, %s1564_s18 }
  0x10   : > { %p41_p7 = scmp.eq.s32.totalorder %s40_s30, 0  ;;  %p1321_p8 = scmp.ge.s32.totalorder %s1584_s23, 4 }
  0x12   : > { %s1703_s13 = scalar_select %p41_p7, %s1564_s18, %s43_s12  }
  0x13   : > { %356 = sbr.rel (%p1321_p8) target bundleno = 32 (0x20), region = 40 }
  0x18   : > { %359 = sbr.rel (!%p52_p5) target bundleno = 32 (0x20), region = 44  ;;  %s361_s14 = sand.u32 (%p52_p5), 1, %s1564_s18  }
  0x19   : > { %s1323_s15 = sshll.u32 (%p52_p5), %s1580_s22, 3  ;;  %s1322_s16 = sshll.u32 (%p52_p5), %s361_s14, 5 }
  0x1a   : > { %s365_s26 = sadd.s32 (%p52_p5), %s1576_s21, %s1323_s15  ;;  %s363_s29 = scalar_lea.vmem (%p52_p5), [#allocation2], %s1322_s16 }
  0x1b   : > { %s1324_s24 = sshll.u32 (%p52_p5), %s365_s26, 3 }
  0x1c   : > { %s367_s27 = scalar_lea.vmem (%p52_p5), %s1881_s0, %s1324_s24 }
  0x1d   : > { %v402_v0 = vld [vmem:[%s367_s27] sm:$0xff]  ;;  %v404_v1 = vld [vmem:[%s367_s27 + $0x10] sm:$0xff] }
  0x1e   : > { %v406_v2 = vld [vmem:[%s367_s27 + $0x20] sm:$0xff]  ;;  %403 = vst [vmem:[%s363_s29] sm:$0xff] %v402_v0  ;;  %405 = vst [vmem:[%s363_s29 + $0x8] sm:$0xff] %v404_v1  ;;  %v408_v3 = vld [vmem:[%s367_s27 + $0x30] sm:$0xff] }
  0x1f   : > { %407 = vst [vmem:[%s363_s29 + $0x10] sm:$0xff] %v406_v2  ;;  %409 = vst [vmem:[%s363_s29 + $0x18] sm:$0xff] %v408_v3 }
  0x20 PF: > { %p1325_p9 = scmp.ge.s32.totalorder %s1584_s23, 1  ;;  %p430_p10 = scmp.lt.s32.totalorder %s1584_s23, 5 }
  0x22   : > { %p431_p11 = pnand %p1325_p9, %p430_p10 }
  0x23   : > { %p498_p12 = scmp.lt.s32.totalorder (!%p431_p11), %s1572_s20, 1 }
  0x24   : > { %434 = sbr.rel (%p431_p11) target bundleno = 594 (0x252), region = 90 }
  0x29   : > { %v1586_v4 = vmov 0   ;;  %s499_s9 = scalar_select %p498_p12, %s1572_s20, 1  ;;  %v813_v13 = vld [vmem:[%s1887_s6 + $0x8] sm:$0xff]  ;;  %v812_v14 = vld [vmem:[%s1887_s6] sm:$0xff]  ;;  %vm619_vm0 = vcmask 261120   ;;  %v815_v17 = vld [vmem:[%s1887_s6 + $0x18] sm:$0xff] }
  0x2a   : > { %1523 = vset.pattern.permute.xlu1 %v1586_v4  ;;  %1522 = vset.pattern.permute.xlu0 %v1586_v4  ;;  %v1524_v15 = vld [vmem:[%s1884_s3] sm:$0xff]   ;;  %v814_v18 = vld [vmem:[%s1887_s6 + $0x10] sm:$0xff]  ;;  %v586_v19 = vld [vmem:[%s1885_s4 + $0x8] sm:$0xff]  ;;  %vm997_vm1 = vcmask 257024  }
  0x2b   : > { %s1716_s11 = sshll.u32 %s499_s9, 5  ;;  %v1525_v16 = vld [vmem:[%s1888_s7] sm:$0xff]   ;;  %1444 = vmatprep.mubr.msk.bf16.mxu0 %vm619_vm0, %v1524_v15  ;;  %v588_v21 = vld [vmem:[%s1885_s4 + $0x18] sm:$0xff]  ;;  %v587_v22 = vld [vmem:[%s1885_s4 + $0x10] sm:$0xff] }
  0x2c   : > { %s507_s12 = scalar_lea.vmem %s1883_s2, %s1716_s11  ;;  %s502_s16 = scalar_lea.vmem %s1882_s1, %s1716_s11  ;;  %1452 = vmatprep.mubr.msk.bf16.mxu1 %vm619_vm0, %v1525_v16  ;;  %v585_v20 = vld [vmem:[%s1885_s4] sm:$0xff]  ;;  %v700_v23 = vld [vmem:[%s1889_s8 + $0x8] sm:$0xff]  ;;  %v702_v25 = vld [vmem:[%s1889_s8 + $0x18] sm:$0xff] }
  0x2d   : > { %v553_v5 = vld [vmem:[%s507_s12 + $0x10] sm:$0xff]  ;;  %v554_v7 = vld [vmem:[%s507_s12 + $0x18] sm:$0xff]  ;;  %v524_v9 = vld [vmem:[%s502_s16 + $0x8] sm:$0xff] }
  0x2e   : > { %567 = vperm.xlu1 %1523, %v553_v5   ;;  %v525_v6 = vld [vmem:[%s502_s16 + $0x10] sm:$0xff]  ;;  %v526_v8 = vld [vmem:[%s502_s16 + $0x18] sm:$0xff]  ;;  %v523_v10 = vld [vmem:[%s502_s16] sm:$0xff] }
  0x2f   : > { %539 = vperm.xlu0 %1522, %v525_v6   ;;  %v552_v11 = vld [vmem:[%s507_s12 + $0x8] sm:$0xff]  ;;  %v551_v12 = vld [vmem:[%s507_s12] sm:$0xff]  ;;  %v701_v26 = vld [vmem:[%s1889_s8 + $0x10] sm:$0xff]  ;;  %s437_s12 = sand.u32 1, %s1560_s17  }
  0x30   : > { %v699_v24 = vld [vmem:[%s1889_s8] sm:$0xff]  ;;  %s1326_s16 = sshll.u32 %s437_s12, 5  ;;  %v1526_v49 = vld [vmem:[%s1884_s3 + $0x8] sm:$0xff]  }
  0x31   : > { %s439_s26 = scalar_lea.vmem [#allocation2], %s1326_s16  ;;  %v1527_v50 = vld [vmem:[%s1888_s7 + $0x8] sm:$0xff]   ;;  %v1528_v51 = vld [vmem:[%s1886_s5] sm:$0xff]  }
  0x32   : > { %572 = vperm.xlu1 %1523, %v554_v7   ;;  %v521_v29 = vld [vmem:[%s439_s26 + $0x10] sm:$0xff]  ;;  %v522_v30 = vld [vmem:[%s439_s26 + $0x18] sm:$0xff]  ;;  %v520_v38 = vld [vmem:[%s439_s26 + $0x8] sm:$0xff] }
  0x33   : > { %544 = vperm.xlu0 %1522, %v526_v8   ;;  %v519_v40 = vld [vmem:[%s439_s26] sm:$0xff]  ;;  %v1529_v52 = vld [vmem:[%s1886_s5 + $0x8] sm:$0xff]   ;;  %s1327_s26 = sshll.u32 %s437_s12, 4  ;;  %s1333_s12 = sshll.u32 %s1568_s19, 4 }
  0x34   : > { %s1791_s27 = scalar_lea.vmem [#allocation3], %s1327_s26  ;;  %s1794_s17 = scalar_lea.vmem [#allocation4], %s1327_s26 }
  0x35   : > { %p511_p13 = scmp.lt.s32.totalorder %s1333_s12, 31 }
  0x36   : > { %534 = vperm.xlu1 %1523, %v524_v9  }
  0x37   : > { %529 = vperm.xlu0 %1522, %v523_v10   ;;  %s1914_s12 = smov (!%p511_p13, %s1333_s12), 31 }
  0x38   : > { %s514_s29 = sadd.s32 %s1716_s11, %s1914_s12  ;;  %s1374_s11 = sshll.u32 (%p1695_p6), %s1572_s20, 3 }
  0x39   : > { %s1335_s9 = sshll.u32 %s514_s29, 2  ;;  %s1035_s15 = sadd.s32 (%p1695_p6), %s1568_s19, %s1374_s11 }
  0x3a   : > { %562 = vperm.xlu1 %1523, %v552_v11   ;;  %s1804_s14 = scalar_lea.vmem %s1891_s10, %s1335_s9  ;;  %s1375_s16 = sshll.u32 (%p1695_p6), %s1035_s15, 2 }
  0x3b   : > { %557 = vperm.xlu0 %1522, %v551_v12   ;;  %s1898_s29 = sld [smem:[#allocation6_spill]] (%p1695_p6) }
  0x3e   : > { %823 = vperm.xlu1 %1523, %v813_v13  }
  0x3f   : > { %818 = vperm.xlu0 %1522, %v812_v14  }
  0x41   : > { %s1037_s9 = scalar_lea.vmem (%p1695_p6), %s1898_s29, %s1375_s16 }
  0x42   : > { %833 = vperm.xlu1 %1523, %v815_v17  }
  0x43   : > { %828 = vperm.xlu0 %1522, %v814_v18  }
  0x46   : > { %596 = vperm.xlu1 %1523, %v586_v19  }
  0x47   : > { %591 = vperm.xlu0 %1522, %v585_v20  }
  0x4a   : > { %606 = vperm.xlu1 %1523, %v588_v21  }
  0x4b   : > { %601 = vperm.xlu0 %1522, %v587_v22  }
  0x4e   : > { %710 = vperm.xlu1 %1523, %v700_v23  }
  0x4f   : > { %705 = vperm.xlu0 %1522, %v699_v24  }
  0x52   : > { %720 = vperm.xlu1 %1523, %v702_v25  }
  0x53   : > { %715 = vperm.xlu0 %1522, %v701_v26  }
  0xa9   : > { %v568_v27 = vpop.permute.xlu1 %567 }
  0xaa   : > { %v540_v28 = vpop.permute.xlu0 %539 }
  0xab   : > { %v549_v31 = vmul.f32 %v540_v28, %v521_v29 }
  0xad   : > { %v573_v32 = vpop.permute.xlu1 %572  ;;  %v577_v35 = vadd.f32 %v568_v27, %v549_v31 }
  0xae   : > { %v545_v33 = vpop.permute.xlu0 %544 }
  0xaf   : > { %v550_v34 = vmul.f32 %v545_v33, %v522_v30 }
  0xb1   : > { %v578_v36 = vadd.f32 %v573_v32, %v550_v34  ;;  %v535_v37 = vpop.permute.xlu1 %534 }
  0xb2   : > { %v530_v39 = vpop.permute.xlu0 %529  ;;  %v548_v42 = vmul.f32 %v535_v37, %v520_v38 }
  0xb3   : > { %v580_v41 = vpack.c.bf16 %v578_v36, %v577_v35  ;;  %v547_v43 = vmul.f32 %v530_v39, %v519_v40 }
  0xb5   : > { %1440 = vmatprep.subr.bf16.mxu0 %v580_v41  ;;  %1448 = vmatprep.subr.bf16.mxu1 %v580_v41  ;;  %v563_v44 = vpop.permute.xlu1 %562 }
  0xb6   : > { %v576_v45 = vadd.f32 %v563_v44, %v548_v42  ;;  %v558_v46 = vpop.permute.xlu0 %557  ;;  %1441 = vmatpush3.bf16.msra.mxu0 %v580_v41  ;;  %1449 = vmatpush3.bf16.msra.mxu1 %v580_v41 }
  0xb7   : > { %v575_v47 = vadd.f32 %v558_v46, %v547_v43 }
  0xb9   : > { %v579_v48 = vpack.c.bf16 %v576_v45, %v575_v47  ;;  %v824_v53 = vpop.permute.xlu1 %823 }
  0xba   : > { %v819_v54 = vpop.permute.xlu0 %818 }
  0xbb   : > { %1442 = vmatprep.subr.bf16.mxu0 %v579_v48  ;;  %1450 = vmatprep.subr.bf16.mxu1 %v579_v48 }
  0xbc   : > { %1443 = vmatpush3.bf16.msra.mxu0 %v579_v48  ;;  %1451 = vmatpush3.bf16.msra.mxu1 %v579_v48 }
  0xbd   : > { %1456 = vmatprep.subr.bf16.mxu0 %v580_v41  ;;  %v834_v55 = vpop.permute.xlu1 %833 }
  0xbe   : > { %v829_v56 = vpop.permute.xlu0 %828 }
  0xbf   : > { %1445 = vmatmul.mubr.msk.bf16.vlgmr.msra.gmra.mxu0 %vm619_vm0, %v1526_v49  ;;  %1453 = vmatmul.mubr.msk.bf16.vlgmr.msra.gmra.mxu1 %vm619_vm0, %v1527_v50 }
  0xc0   : > { %1457 = vmatpush3.bf16.msra.mxu0 %v580_v41  ;;  %1460 = vmatprep.mubr.msk.bf16.mxu0 %vm619_vm0, %v1528_v51 }
  0xc1   : > { %1458 = vmatprep.subr.bf16.mxu0 %v579_v48  ;;  %v597_v57 = vpop.permute.xlu1 %596 }
  0xc2   : > { %v592_v58 = vpop.permute.xlu0 %591 }
  0xc4   : > { %1459 = vmatpush3.bf16.msra.mxu0 %v579_v48 }
  0xc5   : > { %v607_v59 = vpop.permute.xlu1 %606 }
  0xc6   : > { %v602_v60 = vpop.permute.xlu0 %601 }
  0xc7   : > { %1461 = vmatmul.mubr.msk.bf16.vlgmr.msra.gmra.mxu0 %vm619_vm0, %v1529_v52 }
  0xc9   : > { %v711_v61 = vpop.permute.xlu1 %710 }
  0xca   : > { %v706_v62 = vpop.permute.xlu0 %705 }
  0xcd   : > { %v721_v3 = vpop.permute.xlu1 %720 }
  0xce   : > { %v716_v4 = vpop.permute.xlu0 %715 }
 0x17f   : > { %v1446_v63 = vpop.f32.mrf.mxu0  ;;  %v1454_v0 = vpop.f32.mrf.mxu1 }
 0x180   : > { %v669_v7 = vadd.f32 %v1446_v63, %v602_v60  ;;  %v782_v8 = vadd.f32 %v1454_v0, %v716_v4 }
 0x181   : > { %v660_v1 = vpop.f32.mrf.mxu0  ;;  %v773_v2 = vpop.f32.mrf.mxu1 }
 0x182   : > { %v661_v11 = vadd.f32 %v660_v1, %v592_v58  ;;  %v774_v12 = vadd.f32 %v773_v2, %v706_v62 }
 0x183   : > { %v1447_v5 = vpop.f32.mrf.mxu0  ;;  %v1455_v6 = vpop.f32.mrf.mxu1 }
 0x184   : > { %v672_v9 = vadd.f32 %v1447_v5, %v607_v59  ;;  %v785_v10 = vadd.f32 %v1455_v6, %v721_v3 }
 0x185   : > { %v663_v13 = vpop.f32.mrf.mxu0  ;;  %v776_v14 = vpop.f32.mrf.mxu1 }
 0x186   : > { %v1414_v15 = vpack.c.bf16 %v672_v9, %v669_v7  ;;  %v1424_v16 = vpack.c.bf16 %v785_v10, %v782_v8  ;;  %v664_v17 = vadd.f32 %v663_v13, %v597_v57  ;;  %v777_v18 = vadd.f32 %v776_v14, %v711_v61 }
 0x187   : > { %v1462_v19 = vpop.f32.mrf.mxu0 }
 0x188   : > { %1426 = vst [vmem:[%s1791_s27 + $0x8] sm:$0xff] %v1414_v15   ;;  %1427 = vst [vmem:[%s1794_s17 + $0x8] sm:$0xff] %v1424_v16   ;;  %v1409_v20 = vpack.c.bf16 %v664_v17, %v661_v11  ;;  %v1419_v21 = vpack.c.bf16 %v777_v18, %v774_v12  ;;  %v895_v27 = vadd.f32 %v1462_v19, %v829_v56 }
 0x189   : > { %v886_v22 = vpop.f32.mrf.mxu0 }
 0x18a   : > { %1410 = vst [vmem:[%s1791_s27] sm:$0xff] %v1409_v20   ;;  %1420 = vst [vmem:[%s1794_s17] sm:$0xff] %v1419_v21   ;;  %v887_v23 = vadd.f32 %v886_v22, %v819_v54 }
 0x18b   : > { %v1463_v24 = vpop.f32.mrf.mxu0 }
 0x18c   : > { %901 = vxpose.xlu0.b32.start [1/4] (short) %v887_v23, 128  ;;  %v898_v28 = vadd.f32 %v1463_v24, %v834_v55 }
 0x18d   : > { %v889_v25 = vpop.f32.mrf.mxu0 }
 0x18e   : > { %v890_v26 = vadd.f32 %v889_v25, %v824_v53 }
 0x18f   : > { %v1058_v63 = vld [vmem:[%s1791_s27 + $0x8] sm:$0xf] (%p1695_p6)  ;;  %v1060_v0 = vld [vmem:[%s1791_s27 + $0xc] sm:$0xf] (%p1695_p6) }
 0x190   : > { %902 = vxpose.xlu0.b32.cont [2/4] (short) %v890_v26, 128  ;;  %1059 = vst [vmem:[%s1037_s9 + $0x10] sm:$0xf] (%p1695_p6), %v1058_v63  ;;  %1061 = vst [vmem:[%s1037_s9 + $0x18] sm:$0xf] (%p1695_p6), %v1060_v0 }
 0x191   : > { %v1054_v61 = vld [vmem:[%s1791_s27] sm:$0xf] (%p1695_p6)  ;;  %v1056_v62 = vld [vmem:[%s1791_s27 + $0x4] sm:$0xf] (%p1695_p6) }
 0x192   : > { %1055 = vst [vmem:[%s1037_s9] sm:$0xf] (%p1695_p6), %v1054_v61  ;;  %1057 = vst [vmem:[%s1037_s9 + $0x8] sm:$0xf] (%p1695_p6), %v1056_v62 }
 0x194   : > { %903 = vxpose.xlu0.b32.cont [3/4] (short) %v895_v27, 128 }
 0x198   : > { %904 = vxpose.xlu0.b32.end [4/4] (short) %v898_v28, 128 }
 0x208   : > { %v917_v29 = vpop.trf.xlu0 }
 0x209   : > { %v1390_v30 = vpack.c.bf16 %v917_v29, %v917_v29 }
 0x20b   : > { %998 = vst.msk [vmem:[%s1804_s14] sm:$0xf] %vm997_vm1, %v1390_v30 }
 0x20c   : > { %v918_v31 = vpop.trf.xlu0 }
 0x20d   : > { %v1391_v32 = vpack.c.bf16 %v918_v31, %v918_v31 }
 0x20f   : > { %999 = vst.msk [vmem:[%s1804_s14 + $0x4] sm:$0xf] %vm997_vm1, %v1391_v32 }
 0x210   : > { %v919_v33 = vpop.trf.xlu0 }
 0x211   : > { %v1392_v34 = vpack.c.bf16 %v919_v33, %v919_v33 }
 0x213   : > { %1000 = vst.msk [vmem:[%s1804_s14 + $0x8] sm:$0xf] %vm997_vm1, %v1392_v34 }
 0x214   : > { %v920_v35 = vpop.trf.xlu0 }
 0x215   : > { %v1393_v36 = vpack.c.bf16 %v920_v35, %v920_v35 }
 0x217   : > { %1001 = vst.msk [vmem:[%s1804_s14 + $0xc] sm:$0xf] %vm997_vm1, %v1393_v36 }
 0x218   : > { %v921_v37 = vpop.trf.xlu0 }
 0x219   : > { %v1394_v38 = vpack.c.bf16 %v921_v37, %v921_v37 }
 0x21b   : > { %1002 = vst.msk [vmem:[%s1804_s14 + $0x10] sm:$0xf] %vm997_vm1, %v1394_v38 }
 0x21c   : > { %v922_v39 = vpop.trf.xlu0 }
 0x21d   : > { %v1395_v40 = vpack.c.bf16 %v922_v39, %v922_v39 }
 0x21f   : > { %1003 = vst.msk [vmem:[%s1804_s14 + $0x14] sm:$0xf] %vm997_vm1, %v1395_v40 }
 0x220   : > { %v923_v41 = vpop.trf.xlu0 }
 0x221   : > { %v1396_v42 = vpack.c.bf16 %v923_v41, %v923_v41 }
 0x223   : > { %1004 = vst.msk [vmem:[%s1804_s14 + $0x18] sm:$0xf] %vm997_vm1, %v1396_v42 }
 0x224   : > { %v924_v43 = vpop.trf.xlu0 }
 0x225   : > { %v1397_v44 = vpack.c.bf16 %v924_v43, %v924_v43 }
 0x227   : > { %1005 = vst.msk [vmem:[%s1804_s14 + $0x1c] sm:$0xf] %vm997_vm1, %v1397_v44 }
 0x228   : > { %v925_v45 = vpop.trf.xlu0 }
 0x229   : > { %v1398_v46 = vpack.c.bf16 %v925_v45, %v925_v45 }
 0x22b   : > { %1006 = vst.msk [vmem:[%s1804_s14 + $0x20] sm:$0xf] %vm997_vm1, %v1398_v46 }
 0x22c   : > { %v926_v47 = vpop.trf.xlu0 }
 0x22d   : > { %v1399_v48 = vpack.c.bf16 %v926_v47, %v926_v47 }
 0x22f   : > { %1007 = vst.msk [vmem:[%s1804_s14 + $0x24] sm:$0xf] %vm997_vm1, %v1399_v48 }
 0x230   : > { %v927_v49 = vpop.trf.xlu0 }
 0x231   : > { %v1400_v50 = vpack.c.bf16 %v927_v49, %v927_v49 }
 0x233   : > { %1008 = vst.msk [vmem:[%s1804_s14 + $0x28] sm:$0xf] %vm997_vm1, %v1400_v50 }
 0x234   : > { %v928_v51 = vpop.trf.xlu0 }
 0x235   : > { %v1401_v52 = vpack.c.bf16 %v928_v51, %v928_v51 }
 0x237   : > { %1009 = vst.msk [vmem:[%s1804_s14 + $0x2c] sm:$0xf] %vm997_vm1, %v1401_v52 }
 0x238   : > { %v929_v53 = vpop.trf.xlu0 }
 0x239   : > { %v1402_v54 = vpack.c.bf16 %v929_v53, %v929_v53 }
 0x23b   : > { %1010 = vst.msk [vmem:[%s1804_s14 + $0x30] sm:$0xf] %vm997_vm1, %v1402_v54 }
 0x23c   : > { %v930_v55 = vpop.trf.xlu0 }
 0x23d   : > { %v1403_v56 = vpack.c.bf16 %v930_v55, %v930_v55 }
 0x23f   : > { %1011 = vst.msk [vmem:[%s1804_s14 + $0x34] sm:$0xf] %vm997_vm1, %v1403_v56 }
 0x240   : > { %v931_v57 = vpop.trf.xlu0 }
 0x241   : > { %v1404_v58 = vpack.c.bf16 %v931_v57, %v931_v57 }
 0x243   : > { %1012 = vst.msk [vmem:[%s1804_s14 + $0x38] sm:$0xf] %vm997_vm1, %v1404_v58  ;;  %1033 = sbr.rel (!%p1695_p6) target bundleno = 584 (0x248), region = 98 }
 0x244   : > { %v932_v59 = vpop.trf.xlu0 }
 0x245   : > { %v1405_v60 = vpack.c.bf16 %v932_v59, %v932_v59 }
 0x247   : > { %1013 = vst.msk [vmem:[%s1804_s14 + $0x3c] sm:$0xf] %vm997_vm1, %v1405_v60 }
 0x248 PF: > { %1097 = sbr.rel (!%p1695_p6) target bundleno = 594 (0x252), region = 143  ;;  %s1376_s27 = sshll.u32 (%p1695_p6), %s1572_s20, 3  ;;  %v1118_v1 = vld [vmem:[%s1794_s17] sm:$0xf] (%p1695_p6)  ;;  %v1120_v2 = vld [vmem:[%s1794_s17 + $0x4] sm:$0xf] (%p1695_p6) }
 0x249   : > { %s1099_s24 = sadd.s32 (%p1695_p6), %s1568_s19, %s1376_s27  ;;  %v1122_v3 = vld [vmem:[%s1794_s17 + $0x8] sm:$0xf] (%p1695_p6)  ;;  %v1124_v4 = vld [vmem:[%s1794_s17 + $0xc] sm:$0xf] (%p1695_p6)  ;;  %s1899_s15 = sld [smem:[#allocation7_spill]] (%p1695_p6) }
 0x24a   : > { %s1377_s30 = sshll.u32 (%p1695_p6), %s1099_s24, 2 }
 0x24f   : > { %s1101_s16 = scalar_lea.vmem %s1899_s15, %s1377_s30 }
 0x250   : > { %1119 = vst [vmem:[%s1101_s16] sm:$0xf] %v1118_v1  ;;  %1121 = vst [vmem:[%s1101_s16 + $0x8] sm:$0xf] %v1120_v2 }
 0x251   : > { %1123 = vst [vmem:[%s1101_s16 + $0x10] sm:$0xf] %v1122_v3  ;;  %1125 = vst [vmem:[%s1101_s16 + $0x18] sm:$0xf] %v1124_v4 }
 0x252 PF: > { %s22_s23 = sadd.s32 1, %s1584_s23   ;;  %s1900_s28 = sld [smem:[#allocation5_spill]] }
 0x253   : > { %p19_p0 = scmp.ge.s32.totalorder %s22_s23, 6   ;;  %s1901_s17 = smov %s1564_s18 }
 0x254   : > { %s1902_s18 = smov %s1703_s13  ;;  %s1903_s19 = smov %s1576_s21 }
 0x255   : > { %s1904_s20 = smov %s1580_s22  ;;  %s1906_s22 = smov %s1912_s25 }
 0x256   :  { %21 = sbr.rel (!%p19_p0) target bundleno = 7 (0x7), region = 241 }
 0x258   : > { %s1905_s21 = smov %s1900_s28 }

// kernel: memory_efficient_attn_block.3
= control target key start
LH: loop header
LB: loop body
LE: loop exit
PB: predicated region body
PF: predicated region fallthrough
CT: control target
= control target key end

     0   :  { %s2385_s0 = inlined_call_operand.vmem [shape: f32[2,32,256], index: 0, kind: input, shape index: {}]   ;;  %s2386_s1 = inlined_call_operand.vmem [shape: bf16[2,32,256], index: 1, kind: input, shape index: {}]   ;;  %s2387_s2 = inlined_call_operand.vmem [shape: bf16[2,256,32], index: 2, kind: input, shape index: {}]   ;;  %s2388_s3 = inlined_call_operand.vmem [shape: bf16[2,32,256], index: 3, kind: input, shape index: {}]   ;;  %s2389_s4 = inlined_call_operand.vmem [shape: bf16[32,32], index: 4, kind: input, shape index: {}]   ;;  %s2390_s5 = inlined_call_operand.vmem [shape: f32[32,1], index: 5, kind: input, shape index: {}]   ;;  %s2391_s6 = inlined_call_operand.vmem [shape: f32[2,32,256], index: 6, kind: output, shape index: {}]  }
   0x1   :  { %2393 = sst [smem:[#allocation7_spill]] %s2388_s3 }
   0x2   :  { %s1933_s21 = smov 0   ;;  %s1935_s22 = smov 0  }
   0x3   :  { %s1937_s23 = smov 0   ;;  %s1939_s24 = smov 0  }
   0x4   :  { %s1941_s25 = smov 0   ;;  %s1943_s26 = smov 0  }
   0x5   :  { %s1945_s27 = smov 0  }
   0x6 LB: > { %s25_s28 = sadd.s32 1, %s1885_s25  ;;  %s28_s29 = sadd.s32 1, %s1889_s26  ;;  %s1893_s27 = sphi %s1945_s27, %s16_s27   ;;  %s1889_s26 = sphi %s1943_s26, %s2404_s26   ;;  %s1885_s25 = sphi %s1941_s25, %s2403_s25   ;;  %s1881_s24 = sphi %s1939_s24, %s2402_s24   ;;  %s1877_s23 = sphi %s1937_s23, %s2401_s23   ;;  %s1873_s22 = sphi %s1935_s22, %s2400_s22   ;;  %s1869_s21 = sphi %s1933_s21, %s2399_s21  }
   0x7   : > { %p26_p0 = scmp.ge.s32.totalorder %s25_s28, 2  ;;  %p124_p1 = scmp.ne.s32.totalorder %s1873_s22, %s1869_s21 }
   0x8   : > { %p125_p2 = scmp.eq.s32.totalorder %s1893_s27, 0  ;;  %s117_s9 = sadd.s32 1, %s1873_s22 }
   0x9   : > { %s2406_s28 = smov (%p26_p0, %s25_s28), 0  ;;  %s2408_s29 = smov (!%p26_p0, %s28_s29), %s1889_s26 }
   0xa   : > { %p126_p3 = por %p125_p2, %p124_p1  ;;  %p30_p4 = scmp.ge.s32.totalorder %s2408_s29, 2 }
   0xb   : > { %s113_s30 = ssub.s32 %s1885_s25, %s2406_s28  ;;  %p1484_p6 = scmp.ge.s32.totalorder %s1893_s27, 4 }
   0xc   : > { %s2410_s29 = smov (%p30_p4, %s2408_s29), 0 }
   0xd   : > { %2394 = sst [smem:[#allocation6_spill]] %s2410_s29  ;;  %s112_s7 = ssub.s32 %s1889_s26, %s2410_s29 }
   0xe   : > { %s114_s8 = sor.u32 %s113_s30, %s112_s7  ;;  %224 = sbr.rel (%p1484_p6) target bundleno = 31 (0x1f), region = 24 }
   0xf   : > { %p115_p5 = scmp.eq.s32.totalorder %s114_s8, 0 }
  0x11   : > { %s1984_s10 = scalar_select %p115_p5, %s1873_s22, %s117_s9  }
  0x13   : > { %256 = sbr.rel (!%p126_p3) target bundleno = 31 (0x1f), region = 40  ;;  %s258_s11 = sand.u32 (%p126_p3), 1, %s1873_s22  }
  0x14   : > { %s1486_s12 = sshll.u32 (%p126_p3), %s1889_s26, 3  ;;  %s1485_s13 = sshll.u32 (%p126_p3), %s258_s11, 4 }
  0x15   : > { %s262_s14 = sadd.s32 (%p126_p3), %s1885_s25, %s1486_s12  ;;  %s2395_s3 = sld [smem:[#allocation7_spill]] (%p126_p3) }
  0x16   : > { %s1487_s15 = sshll.u32 (%p126_p3), %s262_s14, 2  ;;  %s260_s19 = scalar_lea.vmem (%p126_p3), [#allocation5], %s1485_s13 }
  0x1b   : > { %s264_s18 = scalar_lea.vmem %s2395_s3, %s1487_s15 }
  0x1c   : > { %v281_v0 = vld [vmem:[%s264_s18] sm:$0xf]  ;;  %v283_v1 = vld [vmem:[%s264_s18 + $0x8] sm:$0xf]  ;;  %v285_v2 = vld [vmem:[%s264_s18 + $0x10] sm:$0xf] }
  0x1d   : > { %282 = vst [vmem:[%s260_s19] sm:$0xf] %v281_v0  ;;  %284 = vst [vmem:[%s260_s19 + $0x4] sm:$0xf] %v283_v1  ;;  %v287_v3 = vld [vmem:[%s264_s18 + $0x18] sm:$0xf] }
  0x1e   : > { %286 = vst [vmem:[%s260_s19 + $0x8] sm:$0xf] %v285_v2  ;;  %288 = vst [vmem:[%s260_s19 + $0xc] sm:$0xf] %v287_v3 }
  0x1f PF: > { %p1488_p7 = scmp.ge.s32.totalorder %s1893_s27, 1  ;;  %p319_p8 = scmp.lt.s32.totalorder %s1893_s27, 5 }
  0x21   : > { %p320_p9 = pnand %p1488_p7, %p319_p8 }
  0x22   : > { %s326_s20 = sand.u32 (!%p320_p9), 1, %s1869_s21   ;;  %p374_p10 = scmp.lt.s32.totalorder (!%p320_p9), %s1881_s24, 1 }
  0x23   : > { %323 = sbr.rel (%p320_p9) target bundleno = 847 (0x34f), region = 81  ;;  %s1997_s30 = sshll.u32 (!%p320_p9), %s326_s20, 4 }
  0x24   : > { %s1494_s7 = sshll.u32 (!%p320_p9), %s1877_s23, 4  ;;  %s328_s11 = scalar_lea.vmem (!%p320_p9), [#allocation5], %s1997_s30 }
  0x25   : > { %p387_p11 = scmp.lt.s32.totalorder (!%p320_p9), %s1494_s7, 31  ;;  %p1499_p12 = scmp.ne.s32.totalorder (!%p320_p9), %s1877_s23, 0 }
  0x28   : > { %s2412_s24 = smov (!%p374_p10, %s1881_s24), 1  ;;  %s2414_s7 = smov (!%p387_p11, %s1494_s7), 31 }
  0x29   : > { %s1541_s8 = sshll.u32 %s2412_s24, 6  ;;  %s1542_s9 = sshll.u32 %s2412_s24, 5 }
  0x2a   : > { %s2004_s13 = scalar_lea.vmem %s2385_s0, %s1541_s8  ;;  %s2009_s16 = scalar_lea.vmem %s2386_s1, %s1542_s9 }
  0x2b   : > { %s390_s21 = sadd.s32 %s1542_s9, %s2414_s7  ;;  %s2014_s19 = scalar_lea.vmem %s2391_s6, %s1541_s8 }
  0x2c   : > { %s1496_s20 = sshll.u32 %s390_s21, 2  ;;  %403 = sbr.rel (%p1499_p12) target bundleno = 55 (0x37), region = 89 }
  0x2d   : > { %s2019_s24 = scalar_lea.vmem %s2387_s2, %s1496_s20 }
  0x31   : > { %v404_v4 = vlaneseq  ;;  %v1895_v5 = vmov 0.0   ;;  %v1896_v6 = vmov -inf  }
  0x32   : > { %410 = vst [vmem:[#allocation4 + $0x30] sm:$0xff] %v1895_v5  ;;  %411 = vst [vmem:[#allocation4] sm:$0xff] %v1895_v5 }
  0x33   : > { %412 = vst [vmem:[#allocation4 + $0x18] sm:$0xff] %v1895_v5  ;;  %413 = vst [vmem:[#allocation4 + $0x10] sm:$0xff] %v1895_v5  ;;  %vm406_vm0 = vcmp.lt.s32.totalorder %v404_v4, 256 }
  0x34   : > { %414 = vst [vmem:[#allocation4 + $0x8] sm:$0xff] %v1895_v5  ;;  %415 = vst [vmem:[#allocation4 + $0x20] sm:$0xff] %v1895_v5 }
  0x35   : > { %416 = vst [vmem:[#allocation4 + $0x28] sm:$0xff] %v1895_v5  ;;  %417 = vst [vmem:[#allocation4 + $0x38] sm:$0xff] %v1895_v5 }
  0x36   : > { %408 = vst.msk [vmem:[#allocation2] sm:$0x3] %vm406_vm0, %v1896_v6  ;;  %409 = vst.msk [vmem:[#allocation3] sm:$0x3] %vm406_vm0, %v1895_v5 }
  0x37 PF: > { %v1747_v7 = vld [vmem:[%s2009_s16 + $0x10] ss:$8 sps:$4 sm:$0xff]   ;;  %v1748_v8 = vld [vmem:[%s2009_s16] ss:$8 sps:$4 sm:$0xff]   ;;  %vm494_vm1 = vcmask 261120   ;;  %v643_v57 = vlaneseq  ;;  %p1530_p13 = scmp.ne.s32.totalorder %s1877_s23, 1 }
  0x38   : > { %1592 = vmatprep.subr.bf16.mxu0 %v1747_v7  ;;  %v1749_v9 = vld [vmem:[%s2019_s24] sm:$0xff]   ;;  %v1751_v10 = vld [vmem:[%s2009_s16 + $0x14] ss:$8 sps:$4 sm:$0xff]   ;;  %v1750_v11 = vld [vmem:[%s2019_s24 + $0x8] sm:$0xff]  }
  0x39   : > { %1593 = vmatpush3.bf16.msra.mxu0 %v1747_v7  ;;  %1596 = vmatprep.mubr.msk.bf16.mxu0 %vm494_vm1, %v1749_v9  ;;  %v1752_v12 = vld [vmem:[%s2019_s24 + $0x10] sm:$0xff]   ;;  %v1756_v13 = vld [vmem:[%s2009_s16 + $0x4] ss:$8 sps:$4 sm:$0xff]   ;;  %v1753_v14 = vld [vmem:[%s2019_s24 + $0x18] sm:$0xff]   ;;  %v644_v62 = vshrl.u32 %v643_v57, 7  ;;  %vm2122_vm2 = vcmp.lt.s32.totalorder %v643_v57, 128 }
  0x3a   : > { %1594 = vmatprep.subr.bf16.mxu0 %v1748_v8  ;;  %v1754_v15 = vld [vmem:[%s2019_s24 + $0x20] sm:$0xff]   ;;  %v1755_v16 = vld [vmem:[%s2019_s24 + $0x28] sm:$0xff]   ;;  %v1757_v17 = vld [vmem:[%s2019_s24 + $0x30] sm:$0xff]  }
  0x3b   : > { %v1758_v18 = vld [vmem:[%s2019_s24 + $0x38] sm:$0xff]   ;;  %v2120_v4 = vsub.s32 0, %v644_v62 }
  0x3c   : > { %v2053_v19 = vld [vmem:[%s328_s11] sm:$0xff]  }
  0x3d   : > { %1595 = vmatpush3.bf16.msra.mxu0 %v1748_v8  ;;  %1628 = vmatprep.mubr.bf16.mxu1 %v2053_v19  ;;  %v616_v1 = vld [vmem:[#allocation2] sm:$0x1] }
  0x3e   : > { %1632 = vmatprep.subr.bf16.mxu0 %v1751_v10 }
  0x40   : > { %1597 = vmatmul.mubr.msk.bf16.vlgmr.msra.gmra.mxu0 %vm494_vm1, %v1750_v11 }
  0x41   : > { %1633 = vmatpush3.bf16.msra.mxu0 %v1751_v10  ;;  %1600 = vmatprep.mubr.msk.bf16.mxu0 %vm494_vm1, %v1752_v12 }
  0x42   : > { %1634 = vmatprep.subr.bf16.mxu0 %v1756_v13 }
  0x45   : > { %1635 = vmatpush3.bf16.msra.mxu0 %v1756_v13 }
  0x48   : > { %1601 = vmatmul.mubr.msk.bf16.gmra.mxu0 %vm494_vm1, %v1753_v14 }
  0x49   : > { %1604 = vmatprep.mubr.msk.bf16.mxu0 %vm494_vm1, %v1754_v15 }
  0x50   : > { %1605 = vmatmul.mubr.msk.bf16.gmra.mxu0 %vm494_vm1, %v1755_v16 }
  0x51   : > { %1608 = vmatprep.mubr.msk.bf16.mxu0 %vm494_vm1, %v1757_v17 }
  0x58   : > { %1609 = vmatmul.mubr.msk.bf16.gmra.mxu0 %vm494_vm1, %v1758_v18 }
  0x59   : > { %1636 = vmatprep.mubr.msk.bf16.mxu0 %vm494_vm1, %v1749_v9 }
  0x60   : > { %1637 = vmatmul.mubr.msk.bf16.vlgmr.msra.gmra.mxu0 %vm494_vm1, %v1750_v11 }
  0x61   : > { %1640 = vmatprep.mubr.msk.bf16.mxu0 %vm494_vm1, %v1752_v12 }
  0x68   : > { %1641 = vmatmul.mubr.msk.bf16.gmra.mxu0 %vm494_vm1, %v1753_v14 }
  0x69   : > { %1644 = vmatprep.mubr.msk.bf16.mxu0 %vm494_vm1, %v1754_v15 }
  0x70   : > { %1645 = vmatmul.mubr.msk.bf16.gmra.mxu0 %vm494_vm1, %v1755_v16 }
  0x71   : > { %1648 = vmatprep.mubr.msk.bf16.mxu0 %vm494_vm1, %v1757_v17 }
  0x78   : > { %1649 = vmatmul.mubr.msk.bf16.gmra.mxu0 %vm494_vm1, %v1758_v18 }
 0x100   : > { %v2055_v20 = vpop.f32.mrf.mxu0 }
 0x102   : > { %v2058_v21 = vpop.f32.mrf.mxu0 }
 0x104   : > { %v2060_v22 = vpop.f32.mrf.mxu0 }
 0x106   : > { %v2062_v23 = vpop.f32.mrf.mxu0 }
 0x108   : > { %v2064_v24 = vpop.f32.mrf.mxu0 }
 0x109   : > { %v619_v35 = vmax.f32 %v2055_v20, %v2064_v24 }
 0x10a   : > { %v2066_v25 = vpop.f32.mrf.mxu0 }
 0x10b   : > { %v617_v36 = vmax.f32 %v2058_v21, %v2066_v25 }
 0x10c   : > { %v2068_v26 = vpop.f32.mrf.mxu0 }
 0x10d   : > { %v620_v33 = vmax.f32 %v2060_v22, %v2068_v26 }
 0x10e   : > { %v2070_v27 = vpop.f32.mrf.mxu0 }
 0x10f   : > { %v618_v37 = vmax.f32 %v2062_v23, %v2070_v27 }
 0x110   : > { %v2072_v28 = vpop.f32.mrf.mxu0 }
 0x111   : > { %v623_v40 = vmax.f32 %v619_v35, %v2072_v28 }
 0x112   : > { %v2074_v29 = vpop.f32.mrf.mxu0 }
 0x113   : > { %v621_v41 = vmax.f32 %v617_v36, %v2074_v29 }
 0x114   : > { %v2076_v30 = vpop.f32.mrf.mxu0 }
 0x115   : > { %v624_v38 = vmax.f32 %v620_v33, %v2076_v30 }
 0x116   : > { %v2078_v31 = vpop.f32.mrf.mxu0 }
 0x117   : > { %v622_v42 = vmax.f32 %v618_v37, %v2078_v31 }
 0x118   : > { %v2080_v32 = vpop.f32.mrf.mxu0 }
 0x119   : > { %v627_v45 = vmax.f32 %v623_v40, %v2080_v32 }
 0x11a   : > { %v2084_v34 = vpop.f32.mrf.mxu0 }
 0x11b   : > { %v625_v46 = vmax.f32 %v621_v41, %v2084_v34 }
 0x11c   : > { %v2093_v39 = vpop.f32.mrf.mxu0 }
 0x11d   : > { %v628_v43 = vmax.f32 %v624_v38, %v2093_v39 }
 0x11e   : > { %v2099_v44 = vpop.f32.mrf.mxu0 }
 0x11f   : > { %v626_v47 = vmax.f32 %v622_v42, %v2099_v44  ;;  %v630_v49 = vmax.f32 %v627_v45, %v628_v43 }
 0x120   : > { %v2104_v48 = vpop.f32.mrf.mxu0 }
 0x121   : > { %v629_v50 = vmax.f32 %v625_v46, %v626_v47 }
 0x122   : > { %v2106_v51 = vpop.f32.mrf.mxu0 }
 0x123   : > { %v631_v52 = vmax.f32 %v629_v50, %v630_v49 }
 0x124   : > { %v2108_v53 = vpop.f32.mrf.mxu0 }
 0x125   : > { %v632_v54 = vrot.slane %v631_v52, 4 }
 0x126   : > { %v2110_v55 = vpop.f32.mrf.mxu0 }
 0x127   : > { %v633_v56 = vmax.f32 %v631_v52, %v632_v54 }
 0x128   : > { %v2112_v58 = vpop.f32.mrf.mxu0 }
 0x129   : > { %v634_v59 = vrot.slane %v633_v56, 2 }
 0x12a   : > { %v2114_v60 = vpop.f32.mrf.mxu0 }
 0x12b   : > { %v635_v61 = vmax.f32 %v633_v56, %v634_v59 }
 0x12c   : > { %v2116_v63 = vpop.f32.mrf.mxu0 }
 0x12d   : > { %v636_v0 = vrot.slane %v635_v61, 1 }
 0x12e   : > { %v2118_v2 = vpop.f32.mrf.mxu0 }
 0x12f   : > { %v637_v3 = vmax.f32 %v635_v61, %v636_v0  ;;  %v932_v38 = vmax.f32 %v2110_v55, %v2118_v2 }
 0x130   : > { %v2126_v6 = vpop.f32.mrf.mxu0 }
 0x131   : > { %v638_v7 = vmax.f32 %v616_v1, %v637_v3 }
 0x132   : > { %v2128_v8 = vpop.f32.mrf.mxu0 }
 0x133   : > { %v639_v9 = vsub.f32 %v616_v1, %v638_v7  ;;  %v2131_v10 = vrot.slane %v638_v7, %v2120_v4  ;;  %816 = vst.msk [vmem:[#allocation2] sm:$0x1] %vm2122_vm2, %v638_v7 }
 0x134   : > { %v2135_v11 = vpop.f32.mrf.mxu0 }
 0x135   : > { %v640_v12 = vmul.f32 1.442695, %v639_v9  ;;  %v648_v13 = vsub.f32 %v2058_v21, %v2131_v10  ;;  %v649_v14 = vsub.f32 %v2062_v23, %v2131_v10  ;;  %v650_v15 = vsub.f32 %v2055_v20, %v2131_v10 }
 0x136   : > { %v2143_v16 = vpop.f32.mrf.mxu0  ;;  %v651_v17 = vsub.f32 %v2060_v22, %v2131_v10  ;;  %v652_v36 = vsub.f32 %v2066_v25, %v2131_v10  ;;  %v934_v23 = vmax.f32 %v2108_v53, %v2116_v63  ;;  %v933_v20 = vmax.f32 %v2104_v48, %v2112_v58 }
 0x137   : > { %1761 = vpow2.f32 %v640_v12  ;;  %v664_v33 = vmul.f32 1.442695, %v648_v13  ;;  %v666_v35 = vmul.f32 1.442695, %v649_v14  ;;  %v668_v21 = vmul.f32 1.442695, %v650_v15 }
 0x138   : > { %v2147_v18 = vpop.f32.mrf.mxu0  ;;  %v931_v22 = vmax.f32 %v2106_v51, %v2114_v60  ;;  %v653_v40 = vsub.f32 %v2070_v27, %v2131_v10  ;;  %v670_v25 = vmul.f32 1.442695, %v651_v17  ;;  %v938_v41 = vmax.f32 %v934_v23, %v2135_v11 }
 0x139   : > { %1763 = vpow2.f32 %v664_v33  ;;  %v937_v43 = vmax.f32 %v933_v20, %v2126_v6  ;;  %v936_v46 = vmax.f32 %v932_v38, %v2143_v16  ;;  %v654_v47 = vsub.f32 %v2064_v24, %v2131_v10 }
 0x13a   : > { %v2153_v37 = vpop.f32.mrf.mxu0  ;;  %1765 = vpow2.f32 %v666_v35  ;;  %v935_v45 = vmax.f32 %v931_v22, %v2128_v8  ;;  %v672_v49 = vmul.f32 1.442695, %v652_v36  ;;  %v655_v57 = vsub.f32 %v2068_v26, %v2131_v10 }
 0x13b   : > { %1767 = vpow2.f32 %v668_v21  ;;  %v941_v52 = vmax.f32 %v937_v43, %v2147_v18  ;;  %v674_v59 = vmul.f32 1.442695, %v653_v40  ;;  %v656_v24 = vsub.f32 %v2074_v29, %v2131_v10 }
 0x13c   : > { %v2164_v42 = vpop.f32.mrf.mxu0  ;;  %v939_v54 = vmax.f32 %v935_v45, %v2153_v37  ;;  %1769 = vpow2.f32 %v670_v25  ;;  %v676_v0 = vmul.f32 1.442695, %v654_v47  ;;  %v657_v1 = vsub.f32 %v2078_v31, %v2131_v10  ;;  %v930_v45 = vld [vmem:[#allocation2 + $0x1] sm:$0x1] }
 0x13d   : > { %v942_v50 = vmax.f32 %v938_v41, %v2164_v42  ;;  %1771 = vpow2.f32 %v672_v49  ;;  %v658_v9 = vsub.f32 %v2072_v28, %v2131_v10  ;;  %v678_v26 = vmul.f32 1.442695, %v655_v57 }
 0x13e   : > { %v2172_v27 = vpop.f32.mrf.mxu0  ;;  %1773 = vpow2.f32 %v674_v59  ;;  %v659_v12 = vsub.f32 %v2076_v30, %v2131_v10  ;;  %v680_v14 = vmul.f32 1.442695, %v656_v24  ;;  %v662_v31 = vsub.f32 %v2080_v32, %v2131_v10 }
 0x13f   : > { %v940_v56 = vmax.f32 %v936_v46, %v2172_v27  ;;  %v944_v61 = vmax.f32 %v941_v52, %v942_v50  ;;  %1775 = vpow2.f32 %v676_v0  ;;  %v682_v15 = vmul.f32 1.442695, %v657_v1 }
 0x140   : > { %v663_v28 = vsub.f32 %v2093_v39, %v2131_v10  ;;  %v660_v30 = vsub.f32 %v2084_v34, %v2131_v10  ;;  %1777 = vpow2.f32 %v678_v26  ;;  %v684_v35 = vmul.f32 1.442695, %v658_v9 }
 0x141   : > { %v943_v62 = vmax.f32 %v939_v54, %v940_v56  ;;  %v661_v21 = vsub.f32 %v2099_v44, %v2131_v10  ;;  %v686_v23 = vmul.f32 1.442695, %v659_v12  ;;  %1779 = vpow2.f32 %v680_v14 }
 0x142   : > { %v692_v22 = vmul.f32 1.442695, %v662_v31  ;;  %1781 = vpow2.f32 %v682_v15  ;;  %v694_v40 = vmul.f32 1.442695, %v663_v28  ;;  %v688_v34 = vmul.f32 1.442695, %v660_v30 }
 0x143   : > { %v945_v3 = vmax.f32 %v943_v62, %v944_v61  ;;  %1783 = vpow2.f32 %v684_v35  ;;  %v690_v44 = vmul.f32 1.442695, %v661_v21 }
 0x144   : > { %v2183_v7 = vpop.eup %1761  ;;  %1785 = vpow2.f32 %v686_v23 }
 0x145   : > { %v946_v13 = vrot.slane %v945_v3, 4  ;;  %v2191_v29 = vrot.slane %v2183_v7, %v2120_v4  ;;  %1787 = vpow2.f32 %v692_v22 }
 0x146   : > { %v2197_v33 = vpop.eup %1763  ;;  %1789 = vpow2.f32 %v694_v40 }
 0x147   : > { %v947_v17 = vmax.f32 %v945_v3, %v946_v13  ;;  %v2201_v36 = vpop.eup %1765  ;;  %1791 = vpow2.f32 %v688_v34 }
 0x148   : > { %v698_v32 = vadd.f32 %v2201_v36, %v2197_v33  ;;  %v2207_v39 = vpop.eup %1767  ;;  %1793 = vpow2.f32 %v690_v44 }
 0x149   : > { %v948_v20 = vrot.slane %v947_v17, 2  ;;  %v2210_v41 = vpop.eup %1769 }
 0x14a   : > { %v699_v25 = vadd.f32 %v2207_v39, %v698_v32  ;;  %v2213_v46 = vpop.eup %1771 }
 0x14b   : > { %v949_v38 = vmax.f32 %v947_v17, %v948_v20  ;;  %v2216_v50 = vpop.eup %1773 }
 0x14c   : > { %v700_v43 = vadd.f32 %v2210_v41, %v699_v25  ;;  %v2219_v56 = vpop.eup %1775 }
 0x14d   : > { %v950_v10 = vrot.slane %v949_v38, 1  ;;  %v2227_v62 = vpop.eup %1777 }
 0x14e   : > { %v701_v49 = vadd.f32 %v2213_v46, %v700_v43  ;;  %v2236_v26 = vpop.eup %1779 }
 0x14f   : > { %v951_v47 = vmax.f32 %v949_v38, %v950_v10  ;;  %v1782_v12 = vpop.eup %1781 }
 0x150   : > { %v702_v54 = vadd.f32 %v2216_v50, %v701_v49  ;;  %v1784_v31 = vpop.eup %1783 }
 0x151   : > { %v952_v52 = vmax.f32 %v930_v45, %v951_v47 }
 0x152   : > { %v703_v61 = vadd.f32 %v2219_v56, %v702_v54 }
 0x153   : > { %v953_v57 = vsub.f32 %v930_v45, %v952_v52  ;;  %v2222_v59 = vrot.slane %v952_v52, %v2120_v4  ;;  %1114 = vst.msk [vmem:[#allocation2 + $0x1] sm:$0x1] %vm2122_vm2, %v952_v52 }
 0x154   : > { %v704_v1 = vadd.f32 %v2227_v62, %v703_v61 }
 0x155   : > { %v954_v24 = vmul.f32 1.442695, %v953_v57  ;;  %v962_v0 = vsub.f32 %v2106_v51, %v2222_v59  ;;  %v963_v3 = vsub.f32 %v2110_v55, %v2222_v59  ;;  %v964_v9 = vsub.f32 %v2104_v48, %v2222_v59  ;;  %v1786_v51 = vpop.eup %1785 }
 0x156   : > { %v705_v13 = vadd.f32 %v2236_v26, %v704_v1  ;;  %v965_v14 = vsub.f32 %v2108_v53, %v2222_v59  ;;  %v966_v28 = vsub.f32 %v2114_v60, %v2222_v59  ;;  %v1788_v35 = vpop.eup %1787  ;;  %v967_v23 = vsub.f32 %v2118_v2, %v2222_v59 }
 0x157   : > { %1795 = vpow2.f32 %v954_v24  ;;  %v978_v15 = vmul.f32 1.442695, %v962_v0  ;;  %v980_v55 = vmul.f32 1.442695, %v963_v3  ;;  %v982_v30 = vmul.f32 1.442695, %v964_v9  ;;  %v1790_v48 = vpop.eup %1789 }
 0x158   : > { %v706_v17 = vadd.f32 %v1782_v12, %v705_v13  ;;  %v984_v20 = vmul.f32 1.442695, %v965_v14  ;;  %v1792_v32 = vpop.eup %1791  ;;  %v968_v38 = vsub.f32 %v2112_v58, %v2222_v59  ;;  %v986_v40 = vmul.f32 1.442695, %v966_v28 }
 0x159   : > { %1797 = vpow2.f32 %v978_v15  ;;  %v1794_v53 = vpop.eup %1793  ;;  %v746_v60 = vpack.c.bf16 %v1790_v48, %v1788_v35  ;;  %v969_v25 = vsub.f32 %v2116_v63, %v2222_v59  ;;  %v988_v44 = vmul.f32 1.442695, %v967_v23 }
 0x15a   : > { %v707_v21 = vadd.f32 %v1784_v31, %v706_v17  ;;  %1799 = vpow2.f32 %v980_v55  ;;  %v970_v2 = vsub.f32 %v2128_v8, %v2222_v59  ;;  %v745_v10 = vpack.c.bf16 %v1794_v53, %v1792_v32 }
 0x15b   : > { %1801 = vpow2.f32 %v982_v30  ;;  %1612 = vmatprep.subr.bf16.mxu1 %v746_v60  ;;  %v976_v45 = vsub.f32 %v2147_v18, %v2222_v59  ;;  %v990_v58 = vmul.f32 1.442695, %v968_v38  ;;  %v977_v47 = vsub.f32 %v2164_v42, %v2222_v59 }
 0x15c   : > { %v708_v22 = vadd.f32 %v1786_v51, %v707_v21  ;;  %1803 = vpow2.f32 %v984_v20  ;;  %1613 = vmatpush3.bf16.msra.mxu1 %v746_v60  ;;  %v971_v63 = vsub.f32 %v2143_v16, %v2222_v59  ;;  %v992_v8 = vmul.f32 1.442695, %v969_v25  ;;  %v696_v21 = vld [vmem:[#allocation3] sm:$0x1] }
 0x15d   : > { %1805 = vpow2.f32 %v986_v40  ;;  %1614 = vmatprep.subr.bf16.mxu1 %v745_v10  ;;  %v994_v54 = vmul.f32 1.442695, %v970_v2  ;;  %v744_v57 = vpack.c.bf16 %v1786_v51, %v1784_v31  ;;  %v972_v61 = vsub.f32 %v2126_v6, %v2222_v59 }
 0x15e   : > { %v709_v34 = vadd.f32 %v1792_v32, %v708_v22  ;;  %1807 = vpow2.f32 %v988_v44  ;;  %v1006_v24 = vmul.f32 1.442695, %v976_v45  ;;  %v973_v0 = vsub.f32 %v2135_v11, %v2222_v59 }
 0x15f   : > { %1809 = vpow2.f32 %v990_v58  ;;  %v1008_v16 = vmul.f32 1.442695, %v977_v47  ;;  %v974_v3 = vsub.f32 %v2153_v37, %v2222_v59  ;;  %v996_v9 = vmul.f32 1.442695, %v971_v63 }
 0x160   : > { %v710_v43 = vadd.f32 %v1794_v53, %v709_v34  ;;  %1615 = vmatpush3.bf16.msra.mxu1 %v745_v10  ;;  %1811 = vpow2.f32 %v992_v8  ;;  %v975_v6 = vsub.f32 %v2172_v27, %v2222_v59  ;;  %v743_v31 = vpack.c.bf16 %v1782_v12, %v2236_v26  ;;  %v1760_v8 = vld [vmem:[%s328_s11 + $0x8] sm:$0xff]  }
 0x161   : > { %1616 = vmatprep.subr.bf16.mxu1 %v744_v57  ;;  %1813 = vpow2.f32 %v994_v54  ;;  %v998_v15 = vmul.f32 1.442695, %v972_v61  ;;  %v1000_v37 = vmul.f32 1.442695, %v973_v0  ;;  %v1002_v28 = vmul.f32 1.442695, %v974_v3 }
 0x162   : > { %v711_v52 = vadd.f32 %v1788_v35, %v710_v43  ;;  %1815 = vpow2.f32 %v1006_v24  ;;  %v1004_v26 = vmul.f32 1.442695, %v975_v6  ;;  %v742_v12 = vpack.c.bf16 %v2227_v62, %v2219_v56 }
 0x163   : > { %1817 = vpow2.f32 %v1008_v16  ;;  %v741_v53 = vpack.c.bf16 %v2216_v50, %v2213_v46  ;;  %v697_v56 = vmul.f32 %v2183_v7, %v696_v21  ;;  %v740_v25 = vpack.c.bf16 %v2210_v41, %v2207_v39 }
 0x164   : > { %v2255_v49 = vpop.eup %1795  ;;  %v712_v42 = vadd.f32 %v1790_v48, %v711_v52  ;;  %1617 = vmatpush3.bf16.msra.mxu1 %v744_v57  ;;  %1819 = vpow2.f32 %v996_v9  ;;  %v739_v43 = vpack.c.bf16 %v2201_v36, %v2197_v33 }
 0x165   : > { %v2261_v18 = vrot.slane %v2255_v49, %v2120_v4  ;;  %1618 = vmatprep.subr.bf16.mxu1 %v743_v31  ;;  %1821 = vpow2.f32 %v998_v15 }
 0x166   : > { %v2267_v1 = vpop.eup %1797  ;;  %v713_v13 = vrot.slane %v712_v42, 4  ;;  %1823 = vpow2.f32 %v1000_v37 }
 0x167   : > { %v2271_v14 = vpop.eup %1799  ;;  %1825 = vpow2.f32 %v1002_v28 }
 0x168   : > { %v1012_v11 = vadd.f32 %v2271_v14, %v2267_v1  ;;  %v714_v51 = vadd.f32 %v713_v13, %v712_v42  ;;  %v2278_v17 = vpop.eup %1801  ;;  %1619 = vmatpush3.bf16.msra.mxu1 %v743_v31  ;;  %1827 = vpow2.f32 %v1004_v26  ;;  %v1010_v31 = vld [vmem:[#allocation3 + $0x1] sm:$0x1] }
 0x169   : > { %v2281_v59 = vpop.eup %1803  ;;  %1620 = vmatprep.subr.bf16.mxu1 %v742_v12 }
 0x16a   : > { %v1013_v55 = vadd.f32 %v2278_v17, %v1012_v11  ;;  %v715_v27 = vrot.slane %v714_v51, 2  ;;  %v2286_v48 = vpop.eup %1805  ;;  %v1011_v11 = vmul.f32 %v2255_v49, %v1010_v31  ;;  %v1050_v28 = vpack.c.bf16 %v2281_v59, %v2278_v17  ;;  %v727_v49 = vld [vmem:[#allocation4 + $0x8] sm:$0xff] }
 0x16b   : > { %v1808_v32 = vpop.eup %1807  ;;  %v737_v26 = vmul.f32 %v2191_v29, %v727_v49 }
 0x16c   : > { %v1014_v30 = vadd.f32 %v2281_v59, %v1013_v55  ;;  %v716_v35 = vadd.f32 %v715_v27, %v714_v51  ;;  %1621 = vmatpush3.bf16.msra.mxu1 %v742_v12  ;;  %v1810_v38 = vpop.eup %1809  ;;  %v1049_v55 = vpack.c.bf16 %v2271_v14, %v2267_v1  ;;  %v725_v27 = vld [vmem:[#allocation4 + $0x30] sm:$0xff]  ;;  %v726_v59 = vld [vmem:[#allocation4 + $0x18] sm:$0xff] }
 0x16d   : > { %1622 = vmatprep.subr.bf16.mxu1 %v741_v53  ;;  %v1812_v34 = vpop.eup %1811  ;;  %v735_v17 = vmul.f32 %v2191_v29, %v725_v27 }
 0x16e   : > { %v1015_v23 = vadd.f32 %v2286_v48, %v1014_v30  ;;  %v717_v20 = vrot.slane %v716_v35, 1  ;;  %v1814_v44 = vpop.eup %1813  ;;  %v1052_v13 = vpack.c.bf16 %v1812_v34, %v1810_v38  ;;  %v728_v30 = vld [vmem:[#allocation4 + $0x28] sm:$0xff] }
 0x16f   : > { %v1816_v46 = vpop.eup %1815  ;;  %v738_v21 = vmul.f32 %v2191_v29, %v728_v30 }
 0x170   : > { %v1016_v62 = vadd.f32 %v1808_v32, %v1015_v23  ;;  %v718_v22 = vadd.f32 %v717_v20, %v716_v35  ;;  %1623 = vmatpush3.bf16.msra.mxu1 %v741_v53  ;;  %v1818_v7 = vpop.eup %1817  ;;  %v736_v23 = vmul.f32 %v2191_v29, %v726_v59  ;;  %v1037_v53 = vld [vmem:[#allocation4 + $0x20] sm:$0xff] }
 0x171   : > { %1624 = vmatprep.subr.bf16.mxu1 %v740_v25  ;;  %v1820_v10 = vpop.eup %1819  ;;  %v1056_v39 = vpack.c.bf16 %v1818_v7, %v1816_v46 }
 0x172   : > { %v1017_v40 = vadd.f32 %v1810_v38, %v1016_v62  ;;  %v719_v60 = vadd.f32 %v718_v22, %v697_v56  ;;  %v1822_v58 = vpop.eup %1821  ;;  %v1053_v16 = vpack.c.bf16 %v1820_v10, %v1814_v44  ;;  %v1035_v56 = vld [vmem:[#allocation4] sm:$0xff]  ;;  %v1047_v62 = vmul.f32 %v2261_v18, %v1037_v53  ;;  %v1038_v38 = vld [vmem:[#allocation4 + $0x38] sm:$0xff] }
 0x173   : > { %v1824_v41 = vpop.eup %1823 }
 0x174   : > { %v1018_v2 = vadd.f32 %v1812_v34, %v1017_v40  ;;  %724 = vst.msk [vmem:[#allocation3] sm:$0x1] %vm2122_vm2, %v719_v60  ;;  %1625 = vmatpush3.bf16.msra.mxu1 %v740_v25  ;;  %v1826_v63 = vpop.eup %1825  ;;  %v1054_v36 = vpack.c.bf16 %v1824_v41, %v1822_v58  ;;  %v1045_v60 = vmul.f32 %v2261_v18, %v1035_v56  ;;  %v1036_v25 = vld [vmem:[#allocation4 + $0x10] sm:$0xff] }
 0x175   : > { %1626 = vmatprep.subr.bf16.mxu1 %v739_v43  ;;  %v1828_v52 = vpop.eup %1827 }
 0x176   : > { %v1019_v50 = vadd.f32 %v1814_v44, %v1018_v2  ;;  %v1055_v61 = vpack.c.bf16 %v1828_v52, %v1826_v63  ;;  %v1048_v2 = vmul.f32 %v2261_v18, %v1038_v38 }
 0x178   : > { %v1020_v45 = vadd.f32 %v1820_v10, %v1019_v50  ;;  %1627 = vmatpush3.bf16.msra.mxu1 %v739_v43 }
 0x179   : > { %1652 = vmatprep.subr.bf16.mxu1 %v1056_v39 }
 0x17a   : > { %v1021_v47 = vadd.f32 %v1822_v58, %v1020_v45 }
 0x17b   : > { %1629 = vmatmul.mubr.bf16.vlgmr.msra.gmra.mxu1 %v1760_v8 }
 0x17c   : > { %v1022_v54 = vadd.f32 %v1824_v41, %v1021_v47  ;;  %1653 = vmatpush3.bf16.msra.mxu1 %v1056_v39  ;;  %1668 = vmatprep.mubr.bf16.mxu1 %v2053_v19  ;;  %v1051_v19 = vpack.c.bf16 %v1808_v32, %v2286_v48 }
 0x17d   : > { %1654 = vmatprep.subr.bf16.mxu1 %v1055_v61 }
 0x17e   : > { %v1023_v57 = vadd.f32 %v1826_v63, %v1022_v54 }
 0x180   : > { %v1024_v24 = vadd.f32 %v1828_v52, %v1023_v57  ;;  %1655 = vmatpush3.bf16.msra.mxu1 %v1055_v61 }
 0x181   : > { %1656 = vmatprep.subr.bf16.mxu1 %v1054_v36 }
 0x182   : > { %v1025_v33 = vadd.f32 %v1816_v46, %v1024_v24 }
 0x184   : > { %v1026_v42 = vadd.f32 %v1818_v7, %v1025_v33  ;;  %1657 = vmatpush3.bf16.msra.mxu1 %v1054_v36  ;;  %v1046_v7 = vmul.f32 %v2261_v18, %v1036_v25 }
 0x185   : > { %1658 = vmatprep.subr.bf16.mxu1 %v1053_v16 }
 0x186   : > { %v1027_v0 = vrot.slane %v1026_v42, 4 }
 0x188   : > { %v1028_v3 = vadd.f32 %v1027_v0, %v1026_v42  ;;  %1659 = vmatpush3.bf16.msra.mxu1 %v1053_v16 }
 0x189   : > { %1660 = vmatprep.subr.bf16.mxu1 %v1052_v13 }
 0x18a   : > { %v1029_v9 = vrot.slane %v1028_v3, 2 }
 0x18c   : > { %v1030_v6 = vadd.f32 %v1029_v9, %v1028_v3  ;;  %1661 = vmatpush3.bf16.msra.mxu1 %v1052_v13 }
 0x18d   : > { %1662 = vmatprep.subr.bf16.mxu1 %v1051_v19 }
 0x18e   : > { %v1031_v15 = vrot.slane %v1030_v6, 1 }
 0x190   : > { %v1032_v51 = vadd.f32 %v1031_v15, %v1030_v6  ;;  %1663 = vmatpush3.bf16.msra.mxu1 %v1051_v19 }
 0x191   : > { %1664 = vmatprep.subr.bf16.mxu1 %v1050_v28 }
 0x192   : > { %v1033_v37 = vadd.f32 %v1032_v51, %v1011_v11 }
 0x194   : > { %1034 = vst.msk [vmem:[#allocation3 + $0x1] sm:$0x1] %vm2122_vm2, %v1033_v37  ;;  %1665 = vmatpush3.bf16.msra.mxu1 %v1050_v28 }
 0x195   : > { %1666 = vmatprep.subr.bf16.mxu1 %v1049_v55 }
 0x198   : > { %1667 = vmatpush3.bf16.msra.mxu1 %v1049_v55 }
 0x19b   : > { %1669 = vmatmul.mubr.bf16.vlgmr.msra.gmra.mxu1 %v1760_v8 }
 0x23b   : > { %v1630_v12 = vpop.f32.mrf.mxu1 }
 0x23c   : > { %v810_v35 = vadd.f32 %v1630_v12, %v737_v26 }
 0x23d   : > { %v793_v5 = vpop.f32.mrf.mxu1 }
 0x23e   : > { %814 = vst [vmem:[#allocation4 + $0x8] sm:$0xff] %v810_v35  ;;  %v808_v48 = vadd.f32 %v793_v5, %v735_v17 }
 0x23f   : > { %v1631_v1 = vpop.f32.mrf.mxu1 }
 0x240   : > { %812 = vst [vmem:[#allocation4 + $0x30] sm:$0xff] %v808_v48  ;;  %v811_v14 = vadd.f32 %v1631_v1, %v738_v21 }
 0x241   : > { %v796_v20 = vpop.f32.mrf.mxu1 }
 0x242   : > { %815 = vst [vmem:[#allocation4 + $0x28] sm:$0xff] %v811_v14  ;;  %v809_v32 = vadd.f32 %v796_v20, %v736_v23 }
 0x244   : > { %813 = vst [vmem:[#allocation4 + $0x18] sm:$0xff] %v809_v32 }
 0x25b   : > { %v1670_v22 = vpop.f32.mrf.mxu1 }
 0x25c   : > { %v1108_v40 = vadd.f32 %v1670_v22, %v1047_v62 }
 0x25d   : > { %v1091_v34 = vpop.f32.mrf.mxu1 }
 0x25e   : > { %1112 = vst [vmem:[#allocation4 + $0x20] sm:$0xff] %v1108_v40  ;;  %v1106_v44 = vadd.f32 %v1091_v34, %v1045_v60 }
 0x25f   : > { %v1671_v29 = vpop.f32.mrf.mxu1 }
 0x260   : > { %1110 = vst [vmem:[#allocation4] sm:$0xff] %v1106_v44  ;;  %v1109_v46 = vadd.f32 %v1671_v29, %v1048_v2  ;;  %1118 = sbr.rel (%p1530_p13) target bundleno = 847 (0x34f), region = 93 }
 0x261   : > { %v1094_v50 = vpop.f32.mrf.mxu1 }
 0x262   : > { %1113 = vst [vmem:[#allocation4 + $0x38] sm:$0xff] %v1109_v46  ;;  %v1107_v10 = vadd.f32 %v1094_v50, %v1046_v7 }
 0x264   : > { %1111 = vst [vmem:[#allocation4 + $0x10] sm:$0xff] %v1107_v10 }
 0x265   : > { %v1119_v43 = vld [vmem:[#allocation3] sm:$0x1]  ;;  %v1242_v45 = vld [vmem:[#allocation3 + $0x1] sm:$0x1]  ;;  %v1897_v58 = vmov 0   ;;  %v1143_v41 = vld [vmem:[%s2390_s5 + $0x10] sm:$0xff] }
 0x266   : > { %1835 = vrcp.f32 %v1119_v43  ;;  %1830 = vset.pattern.permute.xlu1 %v1897_v58  ;;  %1829 = vset.pattern.permute.xlu0 %v1897_v58  ;;  %v1831_v39 = vld [vmem:[%s2389_s4] sm:$0xff]   ;;  %v1144_v63 = vld [vmem:[%s2390_s5 + $0x18] sm:$0xff]  ;;  %v1142_v8 = vld [vmem:[%s2390_s5 + $0x8] sm:$0xff] }
 0x267   : > { %1837 = vrcp.f32 %v1242_v45  ;;  %v1832_v18 = vld [vmem:[%s2389_s4] sm:$0xff]   ;;  %1676 = vmatprep.mubr.msk.bf16.mxu0 %vm494_vm1, %v1831_v39  ;;  %1157 = vperm.xlu1 %1830, %v1143_v41   ;;  %v1123_v52 = vld [vmem:[#allocation4 + $0x8] sm:$0xff]  ;;  %v1121_v24 = vld [vmem:[#allocation4 + $0x30] sm:$0xff] }
 0x268   : > { %1684 = vmatprep.mubr.msk.bf16.mxu1 %vm494_vm1, %v1832_v18  ;;  %v1141_v47 = vld [vmem:[%s2390_s5] sm:$0xff]  ;;  %v1124_v54 = vld [vmem:[#allocation4 + $0x28] sm:$0xff]  ;;  %v1356_v50 = vld [vmem:[%s2004_s13 + $0x38] sm:$0xff] }
 0x269   : > { %1147 = vperm.xlu0 %1829, %v1141_v47   ;;  %v1246_v61 = vld [vmem:[#allocation4 + $0x20] sm:$0xff]  ;;  %v1122_v33 = vld [vmem:[#allocation4 + $0x18] sm:$0xff]  ;;  %v1233_v44 = vld [vmem:[%s2004_s13 + $0x30] sm:$0xff] }
 0x26a   : > { %v1247_v0 = vld [vmem:[#allocation4 + $0x38] sm:$0xff]  ;;  %v1244_v16 = vld [vmem:[#allocation4] sm:$0xff]  ;;  %v1231_v58 = vld [vmem:[%s2004_s13 + $0x10] sm:$0xff] }
 0x26b   : > { %1162 = vperm.xlu1 %1830, %v1144_v63   ;;  %v1245_v3 = vld [vmem:[#allocation4 + $0x10] sm:$0xff]  ;;  %v1834_v26 = vld [vmem:[%s2389_s4 + $0x8] sm:$0xff]   ;;  %v1232_v21 = vld [vmem:[%s2004_s13 + $0x20] sm:$0xff] }
 0x26c   : > { %v1355_v20 = vld [vmem:[%s2004_s13 + $0x28] sm:$0xff]  ;;  %v1230_v56 = vld [vmem:[%s2004_s13] sm:$0xff] }
 0x26d   : > { %1152 = vperm.xlu0 %1829, %v1142_v8   ;;  %v1353_v40 = vld [vmem:[%s2004_s13 + $0x8] sm:$0xff] }
 0x26f   : > { %1275 = vperm.xlu1 %1830, %v1142_v8  }
 0x271   : > { %1270 = vperm.xlu0 %1829, %v1141_v47   ;;  %v1354_v47 = vld [vmem:[%s2004_s13 + $0x18] sm:$0xff] }
 0x273   : > { %v1836_v57 = vpop.eup %1835  ;;  %1285 = vperm.xlu1 %1830, %v1144_v63  }
 0x274   : > { %v1838_v36 = vpop.eup %1837  ;;  %v1129_v42 = vrot.slane %v1836_v57, %v2120_v4 }
 0x275   : > { %v1252_v9 = vrot.slane %v1838_v36, %v2120_v4  ;;  %1280 = vperm.xlu0 %1829, %v1143_v41   ;;  %v1833_v4 = vld [vmem:[%s2389_s4 + $0x8] sm:$0xff]  }
 0x276   : > { %v1133_v13 = vmul.f32 %v1129_v42, %v1123_v52  ;;  %v1134_v6 = vmul.f32 %v1129_v42, %v1124_v54  ;;  %v1131_v31 = vmul.f32 %v1129_v42, %v1121_v24  ;;  %v1132_v15 = vmul.f32 %v1129_v42, %v1122_v33 }
 0x277   : > { %v1256_v19 = vmul.f32 %v1252_v9, %v1246_v61  ;;  %v1257_v11 = vmul.f32 %v1252_v9, %v1247_v0  ;;  %v1254_v51 = vmul.f32 %v1252_v9, %v1244_v16  ;;  %v1255_v37 = vmul.f32 %v1252_v9, %v1245_v3 }
 0x278   : > { %v1136_v28 = vpack.c.bf16 %v1134_v6, %v1133_v13  ;;  %v1135_v55 = vpack.c.bf16 %v1132_v15, %v1131_v31 }
 0x279   : > { %v1259_v49 = vpack.c.bf16 %v1257_v11, %v1256_v19  ;;  %v1258_v27 = vpack.c.bf16 %v1255_v37, %v1254_v51 }
 0x27a   : > { %1672 = vmatprep.subr.bf16.mxu0 %v1136_v28 }
 0x27b   : > { %1680 = vmatprep.subr.bf16.mxu1 %v1259_v49  ;;  %1673 = vmatpush3.bf16.msra.mxu0 %v1136_v28 }
 0x27c   : > { %1681 = vmatpush3.bf16.msra.mxu1 %v1259_v49  ;;  %1674 = vmatprep.subr.bf16.mxu0 %v1135_v55 }
 0x27d   : > { %1682 = vmatprep.subr.bf16.mxu1 %v1258_v27 }
 0x27f   : > { %1675 = vmatpush3.bf16.msra.mxu0 %v1135_v55 }
 0x280   : > { %1683 = vmatpush3.bf16.msra.mxu1 %v1258_v27 }
 0x282   : > { %1677 = vmatmul.mubr.msk.bf16.vlgmr.msra.gmra.mxu0 %vm494_vm1, %v1833_v4 }
 0x283   : > { %1685 = vmatmul.mubr.msk.bf16.vlgmr.msra.gmra.mxu1 %vm494_vm1, %v1834_v26 }
 0x2e2   : > { %v1158_v30 = vpop.permute.xlu1 %1157 }
 0x2e4   : > { %v1148_v12 = vpop.permute.xlu0 %1147 }
 0x2e6   : > { %v1163_v17 = vpop.permute.xlu1 %1162 }
 0x2e8   : > { %v1153_v35 = vpop.permute.xlu0 %1152 }
 0x2ea   : > { %v1276_v59 = vpop.permute.xlu1 %1275 }
 0x2ec   : > { %v1271_v5 = vpop.permute.xlu0 %1270 }
 0x2ee   : > { %v1286_v2 = vpop.permute.xlu1 %1285 }
 0x2f0   : > { %v1281_v1 = vpop.permute.xlu0 %1280 }
 0x342   : > { %v1678_v48 = vpop.f32.mrf.mxu0 }
 0x343   : > { %v1224_v14 = vadd.f32 %v1678_v48, %v1158_v30  ;;  %v1686_v23 = vpop.f32.mrf.mxu1 }
 0x344   : > { %v1347_v32 = vadd.f32 %v1686_v23, %v1281_v1  ;;  %v1215_v53 = vpop.f32.mrf.mxu0 }
 0x345   : > { %v1236_v62 = vadd.f32 %v1232_v21, %v1224_v14  ;;  %v1216_v22 = vadd.f32 %v1215_v53, %v1148_v12  ;;  %v1338_v38 = vpop.f32.mrf.mxu1 }
 0x346   : > { %v1359_v60 = vadd.f32 %v1355_v20, %v1347_v32  ;;  %v1339_v34 = vadd.f32 %v1338_v38, %v1271_v5  ;;  %v1679_v25 = vpop.f32.mrf.mxu0 }
 0x347   : > { %1240 = vst [vmem:[%s2014_s19 + $0x20] sm:$0xff] %v1236_v62  ;;  %v1234_v29 = vadd.f32 %v1230_v56, %v1216_v22  ;;  %v1227_v46 = vadd.f32 %v1679_v25, %v1163_v17  ;;  %v1687_v7 = vpop.f32.mrf.mxu1 }
 0x348   : > { %1363 = vst [vmem:[%s2014_s19 + $0x28] sm:$0xff] %v1359_v60  ;;  %v1357_v10 = vadd.f32 %v1353_v40, %v1339_v34  ;;  %v1350_v43 = vadd.f32 %v1687_v7, %v1286_v2  ;;  %v1218_v45 = vpop.f32.mrf.mxu0 }
 0x349   : > { %1238 = vst [vmem:[%s2014_s19] sm:$0xff] %v1234_v29  ;;  %v1237_v39 = vadd.f32 %v1233_v44, %v1227_v46  ;;  %v1219_v18 = vadd.f32 %v1218_v45, %v1153_v35  ;;  %v1341_v41 = vpop.f32.mrf.mxu1 }
 0x34a   : > { %1361 = vst [vmem:[%s2014_s19 + $0x8] sm:$0xff] %v1357_v10  ;;  %v1360_v63 = vadd.f32 %v1356_v50, %v1350_v43  ;;  %v1342_v8 = vadd.f32 %v1341_v41, %v1276_v59 }
 0x34b   : > { %1241 = vst [vmem:[%s2014_s19 + $0x30] sm:$0xff] %v1237_v39  ;;  %v1235_v52 = vadd.f32 %v1231_v58, %v1219_v18 }
 0x34c   : > { %1364 = vst [vmem:[%s2014_s19 + $0x38] sm:$0xff] %v1360_v63  ;;  %v1358_v54 = vadd.f32 %v1354_v47, %v1342_v8 }
 0x34d   : > { %1239 = vst [vmem:[%s2014_s19 + $0x10] sm:$0xff] %v1235_v52 }
 0x34e   : > { %1362 = vst [vmem:[%s2014_s19 + $0x18] sm:$0xff] %v1358_v54 }
 0x34f PF: > { %s16_s27 = sadd.s32 1, %s1893_s27   ;;  %s2398_s13 = sld [smem:[#allocation6_spill]] }
 0x350   : > { %p13_p0 = scmp.ge.s32.totalorder %s16_s27, 6   ;;  %s2399_s21 = smov %s1873_s22 }
 0x351   : > { %s2400_s22 = smov %s1984_s10  ;;  %s2401_s23 = smov %s1885_s25 }
 0x352   : > { %s2402_s24 = smov %s1889_s26  ;;  %s2403_s25 = smov %s2406_s28 }
 0x353   :  { %15 = sbr.rel (!%p13_p0) target bundleno = 6 (0x6), region = 137 }
 0x355   : > { %s2404_s26 = smov %s2398_s13 }

</bundles_post_ra>
